<compile_context>
chip_gen: v7x
topology: tpu7x:2x2x1
jax: 0.10.0
libtpu: 0.0.40
codegen_flags: <defaults>
</compile_context>

<pallas_src>
import math
import functools

import jax
import jax.numpy as jnp
from jax.experimental import pallas as pl
from jax.experimental.pallas import tpu as pltpu


# ---------------------------------------------------------------------------
# helpers
# ---------------------------------------------------------------------------
def _pick_tile(total, target, quantum=128):
    """Largest divisor of `total` <= target that is a multiple of `quantum`
    (quantum=1 -> any divisor).  Falls back to `total` itself."""
    best = None
    for c in range(1, total + 1):
        if total % c == 0 and c <= target and (quantum == 1 or c % quantum == 0):
            best = c
    return best if best is not None else total


def _physical_vmem():
    phys = 128 * 1024 * 1024
    try:
        phys = int(getattr(pltpu.get_tpu_info(), "vmem_capacity_bytes", phys))
    except Exception:
        pass
    return phys


def _vmem_limit(est_bytes):
    """Per-generation scoped-VMEM limit: cap at ~3/4 of physical VMEM
    (~96 MiB on v5e/v6e, ~48 MiB on v7x), 2x headroom over the estimate,
    32 MiB floor (clamped to the cap)."""
    cap = (_physical_vmem() * 3) // 4
    floor = min(32 * 1024 * 1024, cap)
    return int(min(cap, max(floor, 2 * int(est_bytes))))


def _spec(shape, index_map, buffers=None):
    """BlockSpec with an optional pipeline depth; falls back to the default
    double-buffered spec if pipeline_mode / pl.Buffered is unavailable."""
    if buffers is not None and hasattr(pl, "Buffered"):
        try:
            return pl.BlockSpec(shape, index_map, pipeline_mode=pl.Buffered(buffers))
        except TypeError:
            pass
    return pl.BlockSpec(shape, index_map)


def _layer_norm(t, eps=1e-5):
    # F.layer_norm(x, x.shape[-1:]) -- no affine params (matches the module).
    mu = jnp.mean(t, axis=-1, keepdims=True)
    var = jnp.mean(jnp.square(t - mu), axis=-1, keepdims=True)
    return (t - mu) * jax.lax.rsqrt(var + eps)


# ---------------------------------------------------------------------------
# Embedding: scalar-prefetch indexed BlockSpec gather (one table row per grid
# step, auto-pipelined by Pallas).  Table kept as (V, 1, D) so the block's
# last two dims equal the full array dims.
# ---------------------------------------------------------------------------
def _embed_kernel(ids_ref, row_ref, out_ref):
    del ids_ref
    out_ref[...] = row_ref[...]


def embed_forward(ids, table):
    if table.ndim == 2:
        table = table[:, None, :]
    bsz, seq = ids.shape
    v, _, d = table.shape
    n = bsz * seq
    flat = pl.pallas_call(
        _embed_kernel,
        out_shape=jax.ShapeDtypeStruct((n, 1, d), table.dtype),
        grid_spec=pltpu.PrefetchScalarGridSpec(
            num_scalar_prefetch=1,
            grid=(n,),
            in_specs=[pl.BlockSpec((1, 1, d), lambda i, ids: (ids[i], 0, 0))],
            out_specs=pl.BlockSpec((1, 1, d), lambda i, ids: (i, 0, 0)),
        ),
        compiler_params=pltpu.CompilerParams(
            dimension_semantics=("arbitrary",),
        ),
    )(ids.reshape(-1).astype(jnp.int32), table)
    return flat.reshape(bsz, seq, d)


# ---------------------------------------------------------------------------
# Transformer layer kernel.
# grid = (n_batch_tiles, n_hidden_tiles):
#   * on the first hidden tile: fused-QKV projection, RoPE (XLU rolls),
#     causal attention, wo + residual + LayerNorm -> f32 scratch;
#   * the FFN accumulates over hidden tiles (w1 (D, TH), w2 (TH, D));
#   * second residual + LayerNorm emitted on the last hidden tile.
# ---------------------------------------------------------------------------
def _layer_kernel(x_ref, wqkv_ref, wo_ref, bo_ref,
                  w1_ref, b1_ref, w2_ref, b2_ref,
                  cos_ref, sinr_ref, sinl_ref,
                  o_ref, h1_ref, acc_ref, *, n_heads, head_dim):
    ht = pl.program_id(1)
    bf16 = jnp.bfloat16
    bt, s, d = x_ref.shape
    m = bt * s

    @pl.when(ht == 0)
    def _attention():
        x = x_ref[...].reshape(m, d)                      # (Bt*S, D) f32
        x_bf = x.astype(bf16)

        # fused QKV projection: one MXU matmul with N = 3*D
        qkv = jnp.dot(x_bf, wqkv_ref[...], preferred_element_type=jnp.float32)
        q = qkv[:, :d]
        k = qkv[:, d:2 * d]
        v = qkv[:, 2 * d:]

        cos = cos_ref[...]
        sin_r = sinr_ref[...]
        sin_l = sinl_ref[...]

        def rope(t):
            # interleaved-pair rotation (matches the reference RoPE over the
            # full d_model):
            #   out[2i]   = t[2i]   * cos_i - t[2i+1] * sin_i
            #   out[2i+1] = t[2i+1] * cos_i + t[2i]   * sin_i
            # two XLU lane-rolls; wrap-around lanes hit zeros baked into the
            # sin tables so no masking is needed.
            right = pltpu.roll(t, 1, 1)                   # t[:, j-1]
            left = pltpu.roll(t, d - 1, 1)                # t[:, j+1]
            return t * cos + right * sin_r + left * sin_l

        scale = 1.0 / math.sqrt(head_dim)                 # folded into q
        q = rope(q) * scale
        k = rope(k)

        def split_heads(t):                               # (M, D) -> (H*Bt, S, hd)
            t = t.reshape(bt, s, d)
            parts = [t[:, :, h * head_dim:(h + 1) * head_dim]
                     for h in range(n_heads)]
            return jnp.stack(parts, axis=0).reshape(n_heads * bt, s, head_dim)

        q3 = split_heads(q).astype(bf16)
        k3 = split_heads(k).astype(bf16)
        v3 = split_heads(v).astype(bf16)

        # batched-over-(heads x batch) MXU matmuls, f32 accumulation
        scores = jnp.einsum("bqd,bkd->bqk", q3, k3,
                            preferred_element_type=jnp.float32)
        row = jax.lax.broadcasted_iota(jnp.int32, (s, s), 0)
        col = jax.lax.broadcasted_iota(jnp.int32, (s, s), 1)
        causal = (col <= row)[None, :, :]                 # single 2-D mask
        scores = jnp.where(causal, scores, -jnp.inf)
        scores = scores - jnp.max(scores, axis=-1, keepdims=True)
        p = jnp.exp(scores)
        denom = jnp.sum(p, axis=-1, keepdims=True)        # (H*Bt, S, 1)
        # TODO(synk): attn_dropout is identity (eval semantics).
        ctx = jnp.einsum("bqk,bkd->bqd", p.astype(bf16), v3,
                         preferred_element_type=jnp.float32)
        ctx = ctx * pl.reciprocal(denom, approx=False)    # exact normalization

        ctx4 = ctx.reshape(n_heads, bt, s, head_dim)
        attn = jnp.concatenate([ctx4[h] for h in range(n_heads)], axis=-1)
        attn = attn.reshape(m, d)

        h1 = jnp.dot(attn.astype(bf16), wo_ref[...],
                     preferred_element_type=jnp.float32) + bo_ref[...]
        # TODO(synk): res_dropout is identity (eval semantics).
        h1_ref[...] = _layer_norm(h1 + x)                 # residual + LayerNorm
        acc_ref[...] = jnp.zeros_like(acc_ref)

    # ---- feed-forward, accumulated over hidden tiles ----
    h1_bf = h1_ref[...].astype(bf16)
    ff = jnp.dot(h1_bf, w1_ref[...], preferred_element_type=jnp.float32) + b1_ref[...]
    ff = 0.5 * ff * (1.0 + jax.lax.erf(ff * (1.0 / math.sqrt(2.0))))   # exact GELU
    acc_ref[...] += jnp.dot(ff.astype(bf16), w2_ref[...],
                            preferred_element_type=jnp.float32)

    @pl.when(ht == pl.num_programs(1) - 1)
    def _finalize():
        y = _layer_norm(acc_ref[...] + b2_ref[...] + h1_ref[...])
        o_ref[...] = y.reshape(bt, s, d)


def layer_forward(x, lp, rope_tabs, n_heads, hidden_tile=512, batch_tile=1):
    b, s, d = x.shape
    hid = lp["w1"].shape[1]
    th = _pick_tile(hid, hidden_tile, 128)       # never silently the full 4*D
    n_ht = hid // th
    head_dim = d // n_heads
    bt = batch_tile
    n_bt = b // bt
    cos, sin_r, sin_l = rope_tabs                # each (bt*s, d), f32

    kernel = functools.partial(_layer_kernel, n_heads=n_heads, head_dim=head_dim)

    def const(shape):
        zeros = (0,) * len(shape)
        # constant block index across the whole grid -> single-buffered
        return _spec(shape, lambda i, h: zeros, buffers=1)

    in_specs = [
        pl.BlockSpec((bt, s, d), lambda i, h: (i, 0, 0)),     # x (f32)
        const((d, 3 * d)),                                    # fused wqkv (bf16)
        const((d, d)), const((1, d)),                         # wo (bf16), bo (f32)
        pl.BlockSpec((d, th), lambda i, h: (0, h)),           # w1 hidden tile (bf16)
        pl.BlockSpec((1, th), lambda i, h: (0, h)),           # b1 hidden tile (f32)
        pl.BlockSpec((th, d), lambda i, h: (h, 0)),           # w2 hidden tile (bf16)
        const((1, d)),                                        # b2 (f32)
        const((bt * s, d)), const((bt * s, d)), const((bt * s, d)),   # rope tables
    ]

    # resident-VMEM estimate
    est = (2 * 2 * bt * s * d * 4                 # x + out blocks (double-buffered)
           + 3 * d * d * 2 + d * d * 2 + 2 * d * 4   # wqkv + wo (single) + biases
           + 2 * (d * th * 2 + th * 4 + th * d * 2)  # ffn tiles (double-buffered)
           + 3 * bt * s * d * 4                      # rope tables (single)
           + 2 * bt * s * d * 4                      # h1 / acc scratch
           + 3 * n_heads * bt * s * s * 4            # transient scores / probs
           + 8 * bt * s * d * 4)                     # transient q/k/v/ctx staging

    return pl.pallas_call(
        kernel,
        out_shape=jax.ShapeDtypeStruct((b, s, d), jnp.float32),
        grid_spec=pltpu.PrefetchScalarGridSpec(
            num_scalar_prefetch=0,
            grid=(n_bt, n_ht),
            in_specs=in_specs,
            out_specs=pl.BlockSpec((bt, s, d), lambda i, h: (i, 0, 0)),
            scratch_shapes=[pltpu.VMEM((bt * s, d), jnp.float32),   # h1 (post-attn LN)
                            pltpu.VMEM((bt * s, d), jnp.float32)],  # ffn accumulator
        ),
        compiler_params=pltpu.CompilerParams(
            dimension_semantics=("parallel", "arbitrary"),
            vmem_limit_bytes=_vmem_limit(est),
        ),
    )(x, lp["wqkv"], lp["wo"], lp["bo"],
      lp["w1"], lp["b1"], lp["w2"], lp["b2"],
      cos, sin_r, sin_l)


# ---------------------------------------------------------------------------
# Final classifier head (last token only), tiled over the vocab dimension.
# ---------------------------------------------------------------------------
def _fc_kernel(x_ref, w_ref, b_ref, o_ref):
    o_ref[...] = (jnp.dot(x_ref[...].astype(jnp.bfloat16), w_ref[...],
                          preferred_element_type=jnp.float32) + b_ref[...])


def fc_forward(x, w_bf16, b, vocab, tile_target=None):
    bsz, d = x.shape
    v_pad = w_bf16.shape[1]
    if tile_target is None:
        tile_target = 1024 if _physical_vmem() >= 96 * 1024 * 1024 else 512
    tn = _pick_tile(v_pad, tile_target, 128)
    n_steps = v_pad // tn
    est = 2 * bsz * d * 4 + 3 * (d * tn * 2 + tn * 4) + 2 * bsz * tn * 4

    w_spec = _spec((d, tn), lambda j: (0, j), buffers=3 if n_steps >= 3 else None)
    out = pl.pallas_call(
        _fc_kernel,
        out_shape=jax.ShapeDtypeStruct((bsz, v_pad), jnp.float32),
        grid_spec=pltpu.PrefetchScalarGridSpec(
            num_scalar_prefetch=0,
            grid=(n_steps,),
            in_specs=[_spec((bsz, d), lambda j: (0, 0), buffers=1),   # constant block
                      w_spec,
                      pl.BlockSpec((1, tn), lambda j: (0, j))],
            out_specs=pl.BlockSpec((bsz, tn), lambda j: (0, j)),
        ),
        compiler_params=pltpu.CompilerParams(
            dimension_semantics=("parallel",),
            vmem_limit_bytes=_vmem_limit(est),
        ),
    )(x, w_bf16, b)
    return out[:, :vocab]


# ---------------------------------------------------------------------------
# Glue: RoPE tables, parameters, one-time bf16/fused prep, full forward
# ---------------------------------------------------------------------------
def rope_tables(d_model, ctx_len, seq_len, batch_tile=1):
    pos = jnp.arange(ctx_len, dtype=jnp.float32)[:, None]
    div = jnp.exp(jnp.arange(0, d_model, 2, dtype=jnp.float32)
                  * (-math.log(10000.0) / d_model))
    pe = (pos * div)[:seq_len]                                   # (S, D/2)
    cos_h, sin_h = jnp.cos(pe), jnp.sin(pe)
    zeros = jnp.zeros_like(sin_h)
    cos = jnp.repeat(cos_h, 2, axis=1)                                     # c0 c0 c1 c1 ...
    sin_r = jnp.stack([zeros, sin_h], axis=-1).reshape(seq_len, d_model)   # 0 s0 0 s1 ...
    sin_l = jnp.stack([-sin_h, zeros], axis=-1).reshape(seq_len, d_model)  # -s0 0 -s1 0 ...
    tile = lambda t: jnp.tile(t, (batch_tile, 1))                # rows repeat per batch elem
    return tile(cos), tile(sin_r), tile(sin_l)


def init_params(key, cfg):
    d, v = cfg["d_model"], cfg["vocab"]
    hid = 4 * d
    f32 = jnp.float32
    keys = jax.random.split(key, 3 + cfg["n_layers"])
    params = {
        "embedding": 0.02 * jax.random.normal(keys[0], (v, d), f32),
        "fc_w": 0.02 * jax.random.normal(keys[1], (d, v), f32),
        "fc_b": 0.02 * jax.random.normal(keys[2], (1, v), f32),
        "layers": [],
    }
    for l in range(cfg["n_layers"]):
        k = jax.random.split(keys[3 + l], 9)
        params["layers"].append({
            "wq": 0.02 * jax.random.normal(k[0], (d, d), f32),
            "wk": 0.02 * jax.random.normal(k[1], (d, d), f32),
            "wv": 0.02 * jax.random.normal(k[2], (d, d), f32),
            "wo": 0.02 * jax.random.normal(k[3], (d, d), f32),
            "bo": 0.02 * jax.random.normal(k[4], (1, d), f32),
            "w1": 0.02 * jax.random.normal(k[5], (d, hid), f32),
            "b1": 0.02 * jax.random.normal(k[6], (1, hid), f32),
            "w2": 0.02 * jax.random.normal(k[7], (hid, d), f32),
            "b2": 0.02 * jax.random.normal(k[8], (1, d), f32),
        })
    return params


def prepare_params(params):
    """One-time prep: fuse wq/wk/wv, cast matmul weights to bf16, pad the fc
    head to a multiple of 128 lanes, reshape the embedding table for the
    indexed gather.  Run once, outside the per-step forward."""
    bf16 = jnp.bfloat16
    prepared = {"embedding": params["embedding"][:, None, :], "layers": []}
    for lp in params["layers"]:
        prepared["layers"].append({
            "wqkv": jnp.concatenate([lp["wq"], lp["wk"], lp["wv"]], axis=1).astype(bf16),
            "wo": lp["wo"].astype(bf16),
            "bo": lp["bo"],
            "w1": lp["w1"].astype(bf16),
            "b1": lp["b1"],
            "w2": lp["w2"].astype(bf16),
            "b2": lp["b2"],
        })
    v = params["fc_w"].shape[1]
    v_pad = ((v + 127) // 128) * 128
    fw, fb = params["fc_w"], params["fc_b"]
    if v_pad != v:
        fw = jnp.pad(fw, ((0, 0), (0, v_pad - v)))
        fb = jnp.pad(fb, ((0, 0), (0, v_pad - v)))
    prepared["fc_w"] = fw.astype(bf16)
    prepared["fc_b"] = fb
    return prepared


def impulse_gpt_forward(tokens, params, cfg, hidden_tile=512):
    d = cfg["d_model"]
    b, seq = tokens.shape
    x = embed_forward(tokens, params["embedding"])                 # (B, S, D) f32
    # batch tile: raise effective MXU M (= bt*seq) toward >= 256 when possible
    bt = _pick_tile(b, max(1, 256 // max(seq, 1)), 1)
    rope_tabs = rope_tables(d, cfg["ctx_len"], seq, bt)
    for lp in params["layers"]:
        x = layer_forward(x, lp, rope_tabs, cfg["n_heads"],
                          hidden_tile=hidden_tile, batch_tile=bt)
    return fc_forward(x[:, -1, :], params["fc_w"], params["fc_b"], cfg["vocab"])


# ---------------------------------------------------------------------------
# Pure-JAX f32 reference (mirrors the PyTorch module) for the numeric check.
# ---------------------------------------------------------------------------
def reference_forward(tokens, params, cfg):
    d, H = cfg["d_model"], cfg["n_heads"]
    hd = d // H
    b, s = tokens.shape
    x = jnp.take(params["embedding"], tokens.reshape(-1), axis=0).reshape(b, s, d)

    pos = jnp.arange(cfg["ctx_len"], dtype=jnp.float32)[:, None]
    div = jnp.exp(jnp.arange(0, d, 2, dtype=jnp.float32) * (-math.log(10000.0) / d))
    pe = (pos * div)[:s]
    cos, sin = jnp.cos(pe), jnp.sin(pe)

    def rope(t):
        t = t.reshape(b, s, d // 2, 2)
        x1, x2 = t[..., 0], t[..., 1]
        return jnp.stack([x1 * cos - x2 * sin, x1 * sin + x2 * cos],
                         axis=-1).reshape(b, s, d)

    def ln(t):
        mu = t.mean(-1, keepdims=True)
        var = ((t - mu) ** 2).mean(-1, keepdims=True)
        return (t - mu) / jnp.sqrt(var + 1e-5)

    for lp in params["layers"]:
        q = rope(x @ lp["wq"]).reshape(b, s, H, hd).transpose(0, 2, 1, 3)
        k = rope(x @ lp["wk"]).reshape(b, s, H, hd).transpose(0, 2, 1, 3)
        v = (x @ lp["wv"]).reshape(b, s, H, hd).transpose(0, 2, 1, 3)
        att = jnp.einsum("bhqd,bhkd->bhqk", q, k) / math.sqrt(hd)
        mask = jnp.tril(jnp.ones((s, s), dtype=bool))
        att = jnp.where(mask, att, -jnp.inf)
        att = jax.nn.softmax(att, axis=-1)
        o = jnp.einsum("bhqk,bhkd->bhqd", att, v).transpose(0, 2, 1, 3).reshape(b, s, d)
        h1 = ln(o @ lp["wo"] + lp["bo"] + x)
        ffn = jax.nn.gelu(h1 @ lp["w1"] + lp["b1"], approximate=False) @ lp["w2"] + lp["b2"]
        x = ln(ffn + h1)
    return x[:, -1, :] @ params["fc_w"] + params["fc_b"]


# ---------------------------------------------------------------------------
if __name__ == "__main__":
    cfg = dict(vocab=512, d_model=128, ctx_len=32, n_heads=4, n_layers=2)
    batch, seq = 2, 16

    key = jax.random.PRNGKey(0)
    pkey, tkey = jax.random.split(key)
    params = init_params(pkey, cfg)
    prepared = prepare_params(params)          # one-time bf16 / fusion / padding
    tokens = jax.random.randint(tkey, (batch, seq), 0, cfg["vocab"], dtype=jnp.int32)

    fwd = jax.jit(functools.partial(impulse_gpt_forward, cfg=cfg))
    logits = fwd(tokens, prepared)
    jax.block_until_ready(logits)
    assert logits.shape == (batch, cfg["vocab"]), logits.shape
    assert bool(jnp.all(jnp.isfinite(logits)))

    # exact check of the indexed-BlockSpec embedding gather against jnp.take
    emb = embed_forward(tokens, prepared["embedding"])
    ref_emb = jnp.take(params["embedding"], tokens.reshape(-1), axis=0
                       ).reshape(batch, seq, cfg["d_model"])
    assert bool(jnp.all(emb == ref_emb))

    # end-to-end numeric check vs a pure-JAX f32 reference (only differences
    # are bf16 MXU rounding) -> loose tolerance
    ref_logits = reference_forward(tokens, params, cfg)
    assert bool(jnp.max(jnp.abs(logits - ref_logits)) < 5e-2)

    print("KERNEL_OK")
</pallas_src>

<mosaic_0001>
module attributes {stable_mosaic.version = 11 : i64} {
  func.func @_embed_kernel(%arg0: i32, %arg1: memref<32xi32, #tpu.memory_space<smem>>, %arg2: memref<1x1x128xf32, #tpu.memory_space<vmem>>, %arg3: memref<1x1x128xf32, #tpu.memory_space<vmem>>) attributes {dimension_semantics = [#tpu.dimension_semantics<arbitrary>], iteration_bounds = array<i64: 32>, scalar_prefetch = 1 : i64, scratch_operands = 0 : i64, tpu.core_type = #tpu.core_type<tc>, window_params = [{transform_indices = @transform_0, window_bounds = array<i64: 1, 1, 128>}, {transform_indices = @transform_1, window_bounds = array<i64: 1, 1, 128>}]} {
    %c0 = arith.constant 0 : index
    %c0_0 = arith.constant 0 : index
    %c0_1 = arith.constant 0 : index
    %0 = vector.load %arg2[%c0, %c0_0, %c0_1] : memref<1x1x128xf32, #tpu.memory_space<vmem>>, vector<1x1x128xf32>
    %c0_2 = arith.constant 0 : index
    %c0_3 = arith.constant 0 : index
    %c0_4 = arith.constant 0 : index
    %1 = vector.load %arg3[%c0_2, %c0_3, %c0_4] : memref<1x1x128xf32, #tpu.memory_space<vmem>>, vector<1x1x128xf32>
    tpu.vector_store %arg3[%c0_2, %c0_3, %c0_4], %0 {strides = array<i32>} : memref<1x1x128xf32, #tpu.memory_space<vmem>>, vector<1x1x128xf32>,
    return
  }
  func.func @transform_0(%arg0: i32, %arg1: memref<32xi32, #tpu.memory_space<smem>>) -> (i32, i32, i32) {
    %0 = arith.index_cast %arg0 : i32 to index
    %1 = memref.load %arg1[%0] : memref<32xi32, #tpu.memory_space<smem>>
    %c0_i32 = arith.constant 0 : i32
    %c0_i32_0 = arith.constant 0 : i32
    %c0_i32_1 = arith.constant 0 : i32
    return %1, %c0_i32, %c0_i32_0 : i32, i32, i32
  }
  func.func @transform_1(%arg0: i32, %arg1: memref<32xi32, #tpu.memory_space<smem>>) -> (i32, i32, i32) {
    %c0_i32 = arith.constant 0 : i32
    %c0_i32_0 = arith.constant 0 : i32
    %c0_i32_1 = arith.constant 0 : i32
    return %arg0, %c0_i32, %c0_i32_0 : i32, i32, i32
  }
}

module attributes {stable_mosaic.version = 11 : i64} {
  func.func @_layer_kernel(%arg0: i32, %arg1: i32, %arg2: memref<2x16x128xf32, #tpu.memory_space<vmem>>, %arg3: memref<128x384xbf16, #tpu.memory_space<vmem>>, %arg4: memref<128x128xbf16, #tpu.memory_space<vmem>>, %arg5: memref<1x128xf32, #tpu.memory_space<vmem>>, %arg6: memref<128x512xbf16, #tpu.memory_space<vmem>>, %arg7: memref<1x512xf32, #tpu.memory_space<vmem>>, %arg8: memref<512x128xbf16, #tpu.memory_space<vmem>>, %arg9: memref<1x128xf32, #tpu.memory_space<vmem>>, %arg10: memref<32x128xf32, #tpu.memory_space<vmem>>, %arg11: memref<32x128xf32, #tpu.memory_space<vmem>>, %arg12: memref<32x128xf32, #tpu.memory_space<vmem>>, %arg13: memref<2x16x128xf32, #tpu.memory_space<vmem>>, %arg14: memref<32x128xf32, #tpu.memory_space<vmem>>, %arg15: memref<32x128xf32, #tpu.memory_space<vmem>>) attributes {dimension_semantics = [#tpu.dimension_semantics<parallel>, #tpu.dimension_semantics<arbitrary>], iteration_bounds = array<i64: 1, 1>, scalar_prefetch = 0 : i64, scratch_operands = 2 : i64, tpu.core_type = #tpu.core_type<tc>, window_params = [{transform_indices = @transform_0, window_bounds = array<i64: 2, 16, 128>}, {pipeline_mode = #tpu.pipeline_mode<synchronous>, transform_indices = @transform_1, window_bounds = array<i64: 128, 384>}, {pipeline_mode = #tpu.pipeline_mode<synchronous>, transform_indices = @transform_2, window_bounds = array<i64: 128, 128>}, {pipeline_mode = #tpu.pipeline_mode<synchronous>, transform_indices = @transform_3, window_bounds = array<i64: 1, 128>}, {transform_indices = @transform_4, window_bounds = array<i64: 128, 512>}, {transform_indices = @transform_5, window_bounds = array<i64: 1, 512>}, {transform_indices = @transform_6, window_bounds = array<i64: 512, 128>}, {pipeline_mode = #tpu.pipeline_mode<synchronous>, transform_indices = @transform_7, window_bounds = array<i64: 1, 128>}, {pipeline_mode = #tpu.pipeline_mode<synchronous>, transform_indices = @transform_8, window_bounds = array<i64: 32, 128>}, {pipeline_mode = #tpu.pipeline_mode<synchronous>, transform_indices = @transform_9, window_bounds = array<i64: 32, 128>}, {pipeline_mode = #tpu.pipeline_mode<synchronous>, transform_indices = @transform_10, window_bounds = array<i64: 32, 128>}, {transform_indices = @transform_11, window_bounds = array<i64: 2, 16, 128>}]} {
    %c0_i32 = arith.constant 0 : i32
    %0 = arith.cmpi eq, %arg1, %c0_i32 : i32
    %1 = arith.extui %0 : i1 to i32
    %c0_i32_0 = arith.constant 0 : i32
    %2 = arith.cmpi ne, %1, %c0_i32_0 : i32
    scf.if %2 {
      %c0_18 = arith.constant 0 : index
      %c0_19 = arith.constant 0 : index
      %c0_20 = arith.constant 0 : index
      %27 = vector.load %arg2[%c0_18, %c0_19, %c0_20] : memref<2x16x128xf32, #tpu.memory_space<vmem>>, vector<2x16x128xf32>
      %28 = vector.shape_cast %27 : vector<2x16x128xf32> to vector<32x128xf32>
      %29 = arith.truncf %28 : vector<32x128xf32> to vector<32x128xbf16>
      %c0_21 = arith.constant 0 : index
      %c0_22 = arith.constant 0 : index
      %30 = vector.load %arg3[%c0_21, %c0_22] : memref<128x384xbf16, #tpu.memory_space<vmem>>, vector<128x384xbf16>
      %cst_23 = arith.constant dense<0.000000e+00> : vector<32x384xf32>
      %31 = tpu.matmul %29, %30, %cst_23 {dimension_numbers = #tpu.dot_dimension_numbers<[1], [0], [0], [1], [0, 0, 1, 1], [], []>} : vector<32x128xbf16>, vector<128x384xbf16>, vector<32x384xf32> -> vector<32x384xf32>
      %32 = vector.extract_strided_slice %31 {offsets = [0, 0], sizes = [32, 128], strides = [1, 1]} : vector<32x384xf32> to vector<32x128xf32>
      %33 = vector.extract_strided_slice %31 {offsets = [0, 128], sizes = [32, 128], strides = [1, 1]} : vector<32x384xf32> to vector<32x128xf32>
      %34 = vector.extract_strided_slice %31 {offsets = [0, 256], sizes = [32, 128], strides = [1, 1]} : vector<32x384xf32> to vector<32x128xf32>
      %c0_24 = arith.constant 0 : index
      %c0_25 = arith.constant 0 : index
      %35 = vector.load %arg10[%c0_24, %c0_25] : memref<32x128xf32, #tpu.memory_space<vmem>>, vector<32x128xf32>
      %c0_26 = arith.constant 0 : index
      %c0_27 = arith.constant 0 : index
      %36 = vector.load %arg11[%c0_26, %c0_27] : memref<32x128xf32, #tpu.memory_space<vmem>>, vector<32x128xf32>
      %c0_28 = arith.constant 0 : index
      %c0_29 = arith.constant 0 : index
      %37 = vector.load %arg12[%c0_28, %c0_29] : memref<32x128xf32, #tpu.memory_space<vmem>>, vector<32x128xf32>
      %c1_i32 = arith.constant 1 : i32
      %38 = tpu.dynamic_rotate %32 by %c1_i32 dim 1 : vector<32x128xf32>, i32 -> vector<32x128xf32>
      %c127_i32 = arith.constant 127 : i32
      %39 = tpu.dynamic_rotate %32 by %c127_i32 dim 1 : vector<32x128xf32>, i32 -> vector<32x128xf32>
      %40 = arith.mulf %32, %35 : vector<32x128xf32>
      %41 = arith.mulf %38, %36 : vector<32x128xf32>
      %42 = arith.addf %40, %41 : vector<32x128xf32>
      %43 = arith.mulf %39, %37 : vector<32x128xf32>
      %44 = arith.addf %42, %43 : vector<32x128xf32>
      %cst_30 = arith.constant 0.176776692 : f32
      %45 = vector.broadcast %cst_30 : f32 to vector<32x128xf32>
      %46 = arith.mulf %44, %45 : vector<32x128xf32>
      %c1_i32_31 = arith.constant 1 : i32
      %47 = tpu.dynamic_rotate %33 by %c1_i32_31 dim 1 : vector<32x128xf32>, i32 -> vector<32x128xf32>
      %c127_i32_32 = arith.constant 127 : i32
      %48 = tpu.dynamic_rotate %33 by %c127_i32_32 dim 1 : vector<32x128xf32>, i32 -> vector<32x128xf32>
      %49 = arith.mulf %33, %35 : vector<32x128xf32>
      %50 = arith.mulf %47, %36 : vector<32x128xf32>
      %51 = arith.addf %49, %50 : vector<32x128xf32>
      %52 = arith.mulf %48, %37 : vector<32x128xf32>
      %53 = arith.addf %51, %52 : vector<32x128xf32>
      %54 = vector.shape_cast %46 : vector<32x128xf32> to vector<2x16x128xf32>
      %55 = vector.extract_strided_slice %54 {offsets = [0, 0, 0], sizes = [2, 16, 32], strides = [1, 1, 1]} : vector<2x16x128xf32> to vector<2x16x32xf32>
      %56 = vector.extract_strided_slice %54 {offsets = [0, 0, 32], sizes = [2, 16, 32], strides = [1, 1, 1]} : vector<2x16x128xf32> to vector<2x16x32xf32>
      %57 = vector.extract_strided_slice %54 {offsets = [0, 0, 64], sizes = [2, 16, 32], strides = [1, 1, 1]} : vector<2x16x128xf32> to vector<2x16x32xf32>
      %58 = vector.extract_strided_slice %54 {offsets = [0, 0, 96], sizes = [2, 16, 32], strides = [1, 1, 1]} : vector<2x16x128xf32> to vector<2x16x32xf32>
      %59 = vector.shape_cast %55 : vector<2x16x32xf32> to vector<1x2x16x32xf32>
      %60 = vector.shape_cast %56 : vector<2x16x32xf32> to vector<1x2x16x32xf32>
      %61 = vector.shape_cast %57 : vector<2x16x32xf32> to vector<1x2x16x32xf32>
      %62 = vector.shape_cast %58 : vector<2x16x32xf32> to vector<1x2x16x32xf32>
      %63 = tpu.concatenate %59, %60, %61, %62 in 0 : vector<1x2x16x32xf32>, vector<1x2x16x32xf32>, vector<1x2x16x32xf32>, vector<1x2x16x32xf32> -> vector<4x2x16x32xf32>
      %64 = vector.shape_cast %63 : vector<4x2x16x32xf32> to vector<8x16x32xf32>
      %65 = arith.truncf %64 : vector<8x16x32xf32> to vector<8x16x32xbf16>
      %66 = vector.shape_cast %53 : vector<32x128xf32> to vector<2x16x128xf32>
      %67 = vector.extract_strided_slice %66 {offsets = [0, 0, 0], sizes = [2, 16, 32], strides = [1, 1, 1]} : vector<2x16x128xf32> to vector<2x16x32xf32>
      %68 = vector.extract_strided_slice %66 {offsets = [0, 0, 32], sizes = [2, 16, 32], strides = [1, 1, 1]} : vector<2x16x128xf32> to vector<2x16x32xf32>
      %69 = vector.extract_strided_slice %66 {offsets = [0, 0, 64], sizes = [2, 16, 32], strides = [1, 1, 1]} : vector<2x16x128xf32> to vector<2x16x32xf32>
      %70 = vector.extract_strided_slice %66 {offsets = [0, 0, 96], sizes = [2, 16, 32], strides = [1, 1, 1]} : vector<2x16x128xf32> to vector<2x16x32xf32>
      %71 = vector.shape_cast %67 : vector<2x16x32xf32> to vector<1x2x16x32xf32>
      %72 = vector.shape_cast %68 : vector<2x16x32xf32> to vector<1x2x16x32xf32>
      %73 = vector.shape_cast %69 : vector<2x16x32xf32> to vector<1x2x16x32xf32>
      %74 = vector.shape_cast %70 : vector<2x16x32xf32> to vector<1x2x16x32xf32>
      %75 = tpu.concatenate %71, %72, %73, %74 in 0 : vector<1x2x16x32xf32>, vector<1x2x16x32xf32>, vector<1x2x16x32xf32>, vector<1x2x16x32xf32> -> vector<4x2x16x32xf32>
      %76 = vector.shape_cast %75 : vector<4x2x16x32xf32> to vector<8x16x32xf32>
      %77 = arith.truncf %76 : vector<8x16x32xf32> to vector<8x16x32xbf16>
      %78 = vector.shape_cast %34 : vector<32x128xf32> to vector<2x16x128xf32>
      %79 = vector.extract_strided_slice %78 {offsets = [0, 0, 0], sizes = [2, 16, 32], strides = [1, 1, 1]} : vector<2x16x128xf32> to vector<2x16x32xf32>
      %80 = vector.extract_strided_slice %78 {offsets = [0, 0, 32], sizes = [2, 16, 32], strides = [1, 1, 1]} : vector<2x16x128xf32> to vector<2x16x32xf32>
      %81 = vector.extract_strided_slice %78 {offsets = [0, 0, 64], sizes = [2, 16, 32], strides = [1, 1, 1]} : vector<2x16x128xf32> to vector<2x16x32xf32>
      %82 = vector.extract_strided_slice %78 {offsets = [0, 0, 96], sizes = [2, 16, 32], strides = [1, 1, 1]} : vector<2x16x128xf32> to vector<2x16x32xf32>
      %83 = vector.shape_cast %79 : vector<2x16x32xf32> to vector<1x2x16x32xf32>
      %84 = vector.shape_cast %80 : vector<2x16x32xf32> to vector<1x2x16x32xf32>
      %85 = vector.shape_cast %81 : vector<2x16x32xf32> to vector<1x2x16x32xf32>
      %86 = vector.shape_cast %82 : vector<2x16x32xf32> to vector<1x2x16x32xf32>
      %87 = tpu.concatenate %83, %84, %85, %86 in 0 : vector<1x2x16x32xf32>, vector<1x2x16x32xf32>, vector<1x2x16x32xf32>, vector<1x2x16x32xf32> -> vector<4x2x16x32xf32>
      %88 = vector.shape_cast %87 : vector<4x2x16x32xf32> to vector<8x16x32xf32>
      %89 = arith.truncf %88 : vector<8x16x32xf32> to vector<8x16x32xbf16>
      "tpu.trace_start"() <{level = 10 : i32, message = "bqd,bkd->bqk"}> : () -> ()
      %cst_33 = arith.constant dense<0.000000e+00> : vector<8x16x16xf32>
      %90 = tpu.matmul %65, %77, %cst_33 {dimension_numbers = #tpu.dot_dimension_numbers<[2], [2], [1], [1], [0, 0, 0, 1, 1, 1], [0], [0]>} : vector<8x16x32xbf16>, vector<8x16x32xbf16>, vector<8x16x16xf32> -> vector<8x16x16xf32>
      "tpu.trace_stop"() : () -> ()
      %91 = tpu.iota {dimensions = array<i32: 0>} : vector<16x16xi32>
      %92 = tpu.iota {dimensions = array<i32: 1>} : vector<16x16xi32>
      %93 = arith.cmpi sle, %92, %91 : vector<16x16xi32>
      %94 = vector.shape_cast %93 : vector<16x16xi1> to vector<1x16x16xi1>
      %cst_34 = arith.constant 0xFF800000 : f32
      %95 = vector.shape_cast %94 : vector<1x16x16xi1> to vector<1x16x16xi1>
      %96 = vector.broadcast %95 : vector<1x16x16xi1> to vector<8x16x16xi1>
      %97 = vector.broadcast %cst_34 : f32 to vector<8x16x16xf32>
      %98 = arith.select %96, %90, %97 : vector<8x16x16xi1>, vector<8x16x16xf32>
      %cst_35 = arith.constant dense<0xFF800000> : vector<8x16xf32>
      %99 = vector.multi_reduction <maximumf>, %98, %cst_35 [2] : vector<8x16x16xf32> to vector<8x16xf32>
      %100 = vector.shape_cast %99 : vector<8x16xf32> to vector<8x16x1xf32>
      %101 = vector.broadcast %100 : vector<8x16x1xf32> to vector<8x16x16xf32>
      %102 = arith.subf %98, %101 : vector<8x16x16xf32>
      %103 = math.exp %102 : vector<8x16x16xf32>
      %cst_36 = arith.constant dense<0.000000e+00> : vector<8x16xf32>
      %104 = vector.multi_reduction <add>, %103, %cst_36 [2] : vector<8x16x16xf32> to vector<8x16xf32>
      %105 = vector.shape_cast %104 : vector<8x16xf32> to vector<8x16x1xf32>
      %106 = arith.truncf %103 : vector<8x16x16xf32> to vector<8x16x16xbf16>
      "tpu.trace_start"() <{level = 10 : i32, message = "bqk,bkd->bqd"}> : () -> ()
      %cst_37 = arith.constant dense<0.000000e+00> : vector<8x16x32xf32>
      %107 = tpu.matmul %106, %89, %cst_37 {dimension_numbers = #tpu.dot_dimension_numbers<[2], [1], [1], [2], [0, 0, 0, 1, 1, 2], [0], [0]>} : vector<8x16x16xbf16>, vector<8x16x32xbf16>, vector<8x16x32xf32> -> vector<8x16x32xf32>
      "tpu.trace_stop"() : () -> ()
      %108 = tpu.reciprocal %105 : vector<8x16x1xf32> -> vector<8x16x1xf32>
      %109 = vector.broadcast %108 : vector<8x16x1xf32> to vector<8x16x32xf32>
      %110 = arith.mulf %107, %109 : vector<8x16x32xf32>
      %111 = vector.shape_cast %110 : vector<8x16x32xf32> to vector<4x2x16x32xf32>
      %112 = vector.extract_strided_slice %111 {offsets = [0, 0, 0, 0], sizes = [1, 2, 16, 32], strides = [1, 1, 1, 1]} : vector<4x2x16x32xf32> to vector<1x2x16x32xf32>
      %113 = vector.shape_cast %112 : vector<1x2x16x32xf32> to vector<2x16x32xf32>
      %114 = vector.extract_strided_slice %111 {offsets = [1, 0, 0, 0], sizes = [1, 2, 16, 32], strides = [1, 1, 1, 1]} : vector<4x2x16x32xf32> to vector<1x2x16x32xf32>
      %115 = vector.shape_cast %114 : vector<1x2x16x32xf32> to vector<2x16x32xf32>
      %116 = vector.extract_strided_slice %111 {offsets = [2, 0, 0, 0], sizes = [1, 2, 16, 32], strides = [1, 1, 1, 1]} : vector<4x2x16x32xf32> to vector<1x2x16x32xf32>
      %117 = vector.shape_cast %116 : vector<1x2x16x32xf32> to vector<2x16x32xf32>
      %118 = vector.extract_strided_slice %111 {offsets = [3, 0, 0, 0], sizes = [1, 2, 16, 32], strides = [1, 1, 1, 1]} : vector<4x2x16x32xf32> to vector<1x2x16x32xf32>
      %119 = vector.shape_cast %118 : vector<1x2x16x32xf32> to vector<2x16x32xf32>
      %120 = tpu.concatenate %113, %115, %117, %119 in 2 : vector<2x16x32xf32>, vector<2x16x32xf32>, vector<2x16x32xf32>, vector<2x16x32xf32> -> vector<2x16x128xf32>
      %121 = vector.shape_cast %120 : vector<2x16x128xf32> to vector<32x128xf32>
      %122 = arith.truncf %121 : vector<32x128xf32> to vector<32x128xbf16>
      %c0_38 = arith.constant 0 : index
      %c0_39 = arith.constant 0 : index
      %123 = vector.load %arg4[%c0_38, %c0_39] : memref<128x128xbf16, #tpu.memory_space<vmem>>, vector<128x128xbf16>
      %cst_40 = arith.constant dense<0.000000e+00> : vector<32x128xf32>
      %124 = tpu.matmul %122, %123, %cst_40 {dimension_numbers = #tpu.dot_dimension_numbers<[1], [0], [0], [1], [0, 0, 1, 1], [], []>} : vector<32x128xbf16>, vector<128x128xbf16>, vector<32x128xf32> -> vector<32x128xf32>
      %c0_41 = arith.constant 0 : index
      %c0_42 = arith.constant 0 : index
      %125 = vector.load %arg5[%c0_41, %c0_42] : memref<1x128xf32, #tpu.memory_space<vmem>>, vector<1x128xf32>
      %126 = vector.broadcast %125 : vector<1x128xf32> to vector<32x128xf32>
      %127 = arith.addf %124, %126 : vector<32x128xf32>
      %128 = arith.addf %127, %28 : vector<32x128xf32>
      %cst_43 = arith.constant dense<0.000000e+00> : vector<32xf32>
      %129 = vector.multi_reduction <add>, %128, %cst_43 [1] : vector<32x128xf32> to vector<32xf32>
      %130 = vector.shape_cast %129 : vector<32xf32> to vector<32x1xf32>
      %cst_44 = arith.constant 1.280000e+02 : f32
      %131 = vector.broadcast %cst_44 : f32 to vector<32x1xf32>
      %132 = arith.divf %130, %131 : vector<32x1xf32>
      %133 = vector.broadcast %132 : vector<32x1xf32> to vector<32x128xf32>
      %134 = arith.subf %128, %133 : vector<32x128xf32>
      %135 = arith.mulf %134, %134 : vector<32x128xf32>
      %cst_45 = arith.constant dense<0.000000e+00> : vector<32xf32>
      %136 = vector.multi_reduction <add>, %135, %cst_45 [1] : vector<32x128xf32> to vector<32xf32>
      %137 = vector.shape_cast %136 : vector<32xf32> to vector<32x1xf32>
      %cst_46 = arith.constant 1.280000e+02 : f32
      %138 = vector.broadcast %cst_46 : f32 to vector<32x1xf32>
      %139 = arith.divf %137, %138 : vector<32x1xf32>
      %140 = vector.broadcast %132 : vector<32x1xf32> to vector<32x128xf32>
      %141 = arith.subf %128, %140 : vector<32x128xf32>
      %cst_47 = arith.constant 9.99999974E-6 : f32
      %142 = vector.broadcast %cst_47 : f32 to vector<32x1xf32>
      %143 = arith.addf %139, %142 : vector<32x1xf32>
      %144 = math.rsqrt %143 : vector<32x1xf32>
      %145 = vector.broadcast %144 : vector<32x1xf32> to vector<32x128xf32>
      %146 = arith.mulf %141, %145 : vector<32x128xf32>
      %c0_48 = arith.constant 0 : index
      %c0_49 = arith.constant 0 : index
      %147 = vector.load %arg14[%c0_48, %c0_49] : memref<32x128xf32, #tpu.memory_space<vmem>>, vector<32x128xf32>
      tpu.vector_store %arg14[%c0_48, %c0_49], %146 {strides = array<i32>} : memref<32x128xf32, #tpu.memory_space<vmem>>, vector<32x128xf32>,
      %cst_50 = arith.constant 0.000000e+00 : f32
      %148 = vector.broadcast %cst_50 : f32 to vector<32x128xf32>
      %c0_51 = arith.constant 0 : index
      %c0_52 = arith.constant 0 : index
      %149 = vector.load %arg15[%c0_51, %c0_52] : memref<32x128xf32, #tpu.memory_space<vmem>>, vector<32x128xf32>
      tpu.vector_store %arg15[%c0_51, %c0_52], %148 {strides = array<i32>} : memref<32x128xf32, #tpu.memory_space<vmem>>, vector<32x128xf32>,
    } else {
    }
    %c0 = arith.constant 0 : index
    %c0_1 = arith.constant 0 : index
    %3 = vector.load %arg14[%c0, %c0_1] : memref<32x128xf32, #tpu.memory_space<vmem>>, vector<32x128xf32>
    %4 = arith.truncf %3 : vector<32x128xf32> to vector<32x128xbf16>
    %c0_2 = arith.constant 0 : index
    %c0_3 = arith.constant 0 : index
    %5 = vector.load %arg6[%c0_2, %c0_3] : memref<128x512xbf16, #tpu.memory_space<vmem>>, vector<128x512xbf16>
    %cst = arith.constant dense<0.000000e+00> : vector<32x512xf32>
    %6 = tpu.matmul %4, %5, %cst {dimension_numbers = #tpu.dot_dimension_numbers<[1], [0], [0], [1], [0, 0, 1, 1], [], []>} : vector<32x128xbf16>, vector<128x512xbf16>, vector<32x512xf32> -> vector<32x512xf32>
    %c0_4 = arith.constant 0 : index
    %c0_5 = arith.constant 0 : index
    %7 = vector.load %arg7[%c0_4, %c0_5] : memref<1x512xf32, #tpu.memory_space<vmem>>, vector<1x512xf32>
    %8 = vector.broadcast %7 : vector<1x512xf32> to vector<32x512xf32>
    %9 = arith.addf %6, %8 : vector<32x512xf32>
    %cst_6 = arith.constant 5.000000e-01 : f32
    %10 = vector.broadcast %cst_6 : f32 to vector<32x512xf32>
    %11 = arith.mulf %10, %9 : vector<32x512xf32>
    %cst_7 = arith.constant 0.707106769 : f32
    %12 = vector.broadcast %cst_7 : f32 to vector<32x512xf32>
    %13 = arith.mulf %9, %12 : vector<32x512xf32>
    %14 = math.erf %13 : vector<32x512xf32>
    %cst_8 = arith.constant 1.000000e+00 : f32
    %15 = vector.broadcast %cst_8 : f32 to vector<32x512xf32>
    %16 = arith.addf %15, %14 : vector<32x512xf32>
    %17 = arith.mulf %11, %16 : vector<32x512xf32>
    %c0_9 = arith.constant 0 : index
    %c0_10 = arith.constant 0 : index
    %18 = vector.load %arg15[%c0_9, %c0_10] : memref<32x128xf32, #tpu.memory_space<vmem>>, vector<32x128xf32>
    %19 = arith.truncf %17 : vector<32x512xf32> to vector<32x512xbf16>
    %c0_11 = arith.constant 0 : index
    %c0_12 = arith.constant 0 : index
    %20 = vector.load %arg8[%c0_11, %c0_12] : memref<512x128xbf16, #tpu.memory_space<vmem>>, vector<512x128xbf16>
    %cst_13 = arith.constant dense<0.000000e+00> : vector<32x128xf32>
    %21 = tpu.matmul %19, %20, %cst_13 {dimension_numbers = #tpu.dot_dimension_numbers<[1], [0], [0], [1], [0, 0, 1, 1], [], []>} : vector<32x512xbf16>, vector<512x128xbf16>, vector<32x128xf32> -> vector<32x128xf32>
    %22 = arith.addf %18, %21 : vector<32x128xf32>
    %c0_14 = arith.constant 0 : index
    %c0_15 = arith.constant 0 : index
    %23 = vector.load %arg15[%c0_14, %c0_15] : memref<32x128xf32, #tpu.memory_space<vmem>>, vector<32x128xf32>
    tpu.vector_store %arg15[%c0_14, %c0_15], %22 {strides = array<i32>} : memref<32x128xf32, #tpu.memory_space<vmem>>, vector<32x128xf32>,
    %c0_i32_16 = arith.constant 0 : i32
    %24 = arith.cmpi eq, %arg1, %c0_i32_16 : i32
    %25 = arith.extui %24 : i1 to i32
    %c0_i32_17 = arith.constant 0 : i32
    %26 = arith.cmpi ne, %25, %c0_i32_17 : i32
    scf.if %26 {
      %c0_18 = arith.constant 0 : index
      %c0_19 = arith.constant 0 : index
      %27 = vector.load %arg15[%c0_18, %c0_19] : memref<32x128xf32, #tpu.memory_space<vmem>>, vector<32x128xf32>
      %c0_20 = arith.constant 0 : index
      %c0_21 = arith.constant 0 : index
      %28 = vector.load %arg9[%c0_20, %c0_21] : memref<1x128xf32, #tpu.memory_space<vmem>>, vector<1x128xf32>
      %29 = vector.broadcast %28 : vector<1x128xf32> to vector<32x128xf32>
      %30 = arith.addf %27, %29 : vector<32x128xf32>
      %c0_22 = arith.constant 0 : index
      %c0_23 = arith.constant 0 : index
      %31 = vector.load %arg14[%c0_22, %c0_23] : memref<32x128xf32, #tpu.memory_space<vmem>>, vector<32x128xf32>
      %32 = arith.addf %30, %31 : vector<32x128xf32>
      %cst_24 = arith.constant dense<0.000000e+00> : vector<32xf32>
      %33 = vector.multi_reduction <add>, %32, %cst_24 [1] : vector<32x128xf32> to vector<32xf32>
      %34 = vector.shape_cast %33 : vector<32xf32> to vector<32x1xf32>
      %cst_25 = arith.constant 1.280000e+02 : f32
      %35 = vector.broadcast %cst_25 : f32 to vector<32x1xf32>
      %36 = arith.divf %34, %35 : vector<32x1xf32>
      %37 = vector.broadcast %36 : vector<32x1xf32> to vector<32x128xf32>
      %38 = arith.subf %32, %37 : vector<32x128xf32>
      %39 = arith.mulf %38, %38 : vector<32x128xf32>
      %cst_26 = arith.constant dense<0.000000e+00> : vector<32xf32>
      %40 = vector.multi_reduction <add>, %39, %cst_26 [1] : vector<32x128xf32> to vector<32xf32>
      %41 = vector.shape_cast %40 : vector<32xf32> to vector<32x1xf32>
      %cst_27 = arith.constant 1.280000e+02 : f32
      %42 = vector.broadcast %cst_27 : f32 to vector<32x1xf32>
      %43 = arith.divf %41, %42 : vector<32x1xf32>
      %44 = vector.broadcast %36 : vector<32x1xf32> to vector<32x128xf32>
      %45 = arith.subf %32, %44 : vector<32x128xf32>
      %cst_28 = arith.constant 9.99999974E-6 : f32
      %46 = vector.broadcast %cst_28 : f32 to vector<32x1xf32>
      %47 = arith.addf %43, %46 : vector<32x1xf32>
      %48 = math.rsqrt %47 : vector<32x1xf32>
      %49 = vector.broadcast %48 : vector<32x1xf32> to vector<32x128xf32>
      %50 = arith.mulf %45, %49 : vector<32x128xf32>
      %51 = vector.shape_cast %50 : vector<32x128xf32> to vector<2x16x128xf32>
      %c0_29 = arith.constant 0 : index
      %c0_30 = arith.constant 0 : index
      %c0_31 = arith.constant 0 : index
      %52 = vector.load %arg13[%c0_29, %c0_30, %c0_31] : memref<2x16x128xf32, #tpu.memory_space<vmem>>, vector<2x16x128xf32>
      tpu.vector_store %arg13[%c0_29, %c0_30, %c0_31], %51 {strides = array<i32>} : memref<2x16x128xf32, #tpu.memory_space<vmem>>, vector<2x16x128xf32>,
    } else {
    }
    return
  }
  func.func @transform_0(%arg0: i32, %arg1: i32) -> (i32, i32, i32) {
    %c0_i32 = arith.constant 0 : i32
    %c0_i32_0 = arith.constant 0 : i32
    %c0_i32_1 = arith.constant 0 : i32
    return %arg0, %c0_i32, %c0_i32_0 : i32, i32, i32
  }
  func.func @transform_1(%arg0: i32, %arg1: i32) -> (i32, i32) {
    %c0_i32 = arith.constant 0 : i32
    %c0_i32_0 = arith.constant 0 : i32
    %c0_i32_1 = arith.constant 0 : i32
    return %c0_i32, %c0_i32_0 : i32, i32
  }
  func.func @transform_2(%arg0: i32, %arg1: i32) -> (i32, i32) {
    %c0_i32 = arith.constant 0 : i32
    %c0_i32_0 = arith.constant 0 : i32
    %c0_i32_1 = arith.constant 0 : i32
    return %c0_i32, %c0_i32_0 : i32, i32
  }
  func.func @transform_3(%arg0: i32, %arg1: i32) -> (i32, i32) {
    %c0_i32 = arith.constant 0 : i32
    %c0_i32_0 = arith.constant 0 : i32
    %c0_i32_1 = arith.constant 0 : i32
    return %c0_i32, %c0_i32_0 : i32, i32
  }
  func.func @transform_4(%arg0: i32, %arg1: i32) -> (i32, i32) {
    %c0_i32 = arith.constant 0 : i32
    %c0_i32_0 = arith.constant 0 : i32
    return %c0_i32, %arg1 : i32, i32
  }
  func.func @transform_5(%arg0: i32, %arg1: i32) -> (i32, i32) {
    %c0_i32 = arith.constant 0 : i32
    %c0_i32_0 = arith.constant 0 : i32
    return %c0_i32, %arg1 : i32, i32
  }
  func.func @transform_6(%arg0: i32, %arg1: i32) -> (i32, i32) {
    %c0_i32 = arith.constant 0 : i32
    %c0_i32_0 = arith.constant 0 : i32
    return %arg1, %c0_i32 : i32, i32
  }
  func.func @transform_7(%arg0: i32, %arg1: i32) -> (i32, i32) {
    %c0_i32 = arith.constant 0 : i32
    %c0_i32_0 = arith.constant 0 : i32
    %c0_i32_1 = arith.constant 0 : i32
    return %c0_i32, %c0_i32_0 : i32, i32
  }
  func.func @transform_8(%arg0: i32, %arg1: i32) -> (i32, i32) {
    %c0_i32 = arith.constant 0 : i32
    %c0_i32_0 = arith.constant 0 : i32
    %c0_i32_1 = arith.constant 0 : i32
    return %c0_i32, %c0_i32_0 : i32, i32
  }
  func.func @transform_9(%arg0: i32, %arg1: i32) -> (i32, i32) {
    %c0_i32 = arith.constant 0 : i32
    %c0_i32_0 = arith.constant 0 : i32
    %c0_i32_1 = arith.constant 0 : i32
    return %c0_i32, %c0_i32_0 : i32, i32
  }
  func.func @transform_10(%arg0: i32, %arg1: i32) -> (i32, i32) {
    %c0_i32 = arith.constant 0 : i32
    %c0_i32_0 = arith.constant 0 : i32
    %c0_i32_1 = arith.constant 0 : i32
    return %c0_i32, %c0_i32_0 : i32, i32
  }
  func.func @transform_11(%arg0: i32, %arg1: i32) -> (i32, i32, i32) {
    %c0_i32 = arith.constant 0 : i32
    %c0_i32_0 = arith.constant 0 : i32
    %c0_i32_1 = arith.constant 0 : i32
    return %arg0, %c0_i32, %c0_i32_0 : i32, i32, i32
  }
}

module attributes {stable_mosaic.version = 11 : i64} {
  func.func @_fc_kernel(%arg0: i32, %arg1: memref<2x128xf32, #tpu.memory_space<vmem>>, %arg2: memref<128x512xbf16, #tpu.memory_space<vmem>>, %arg3: memref<1x512xf32, #tpu.memory_space<vmem>>, %arg4: memref<2x512xf32, #tpu.memory_space<vmem>>) attributes {dimension_semantics = [#tpu.dimension_semantics<parallel>], iteration_bounds = array<i64: 1>, scalar_prefetch = 0 : i64, scratch_operands = 0 : i64, tpu.core_type = #tpu.core_type<tc>, window_params = [{pipeline_mode = #tpu.pipeline_mode<synchronous>, transform_indices = @transform_0, window_bounds = array<i64: 2, 128>}, {transform_indices = @transform_1, window_bounds = array<i64: 128, 512>}, {transform_indices = @transform_2, window_bounds = array<i64: 1, 512>}, {transform_indices = @transform_3, window_bounds = array<i64: 2, 512>}]} {
    %c0 = arith.constant 0 : index
    %c0_0 = arith.constant 0 : index
    %0 = vector.load %arg1[%c0, %c0_0] : memref<2x128xf32, #tpu.memory_space<vmem>>, vector<2x128xf32>
    %1 = arith.truncf %0 : vector<2x128xf32> to vector<2x128xbf16>
    %c0_1 = arith.constant 0 : index
    %c0_2 = arith.constant 0 : index
    %2 = vector.load %arg2[%c0_1, %c0_2] : memref<128x512xbf16, #tpu.memory_space<vmem>>, vector<128x512xbf16>
    %cst = arith.constant dense<0.000000e+00> : vector<2x512xf32>
    %3 = tpu.matmul %1, %2, %cst {dimension_numbers = #tpu.dot_dimension_numbers<[1], [0], [0], [1], [0, 0, 1, 1], [], []>} : vector<2x128xbf16>, vector<128x512xbf16>, vector<2x512xf32> -> vector<2x512xf32>
    %c0_3 = arith.constant 0 : index
    %c0_4 = arith.constant 0 : index
    %4 = vector.load %arg3[%c0_3, %c0_4] : memref<1x512xf32, #tpu.memory_space<vmem>>, vector<1x512xf32>
    %5 = vector.broadcast %4 : vector<1x512xf32> to vector<2x512xf32>
    %6 = arith.addf %3, %5 : vector<2x512xf32>
    %c0_5 = arith.constant 0 : index
    %c0_6 = arith.constant 0 : index
    %7 = vector.load %arg4[%c0_5, %c0_6] : memref<2x512xf32, #tpu.memory_space<vmem>>, vector<2x512xf32>
    tpu.vector_store %arg4[%c0_5, %c0_6], %6 {strides = array<i32>} : memref<2x512xf32, #tpu.memory_space<vmem>>, vector<2x512xf32>,
    return
  }
  func.func @transform_0(%arg0: i32) -> (i32, i32) {
    %c0_i32 = arith.constant 0 : i32
    %c0_i32_0 = arith.constant 0 : i32
    %c0_i32_1 = arith.constant 0 : i32
    return %c0_i32, %c0_i32_0 : i32, i32
  }
  func.func @transform_1(%arg0: i32) -> (i32, i32) {
    %c0_i32 = arith.constant 0 : i32
    %c0_i32_0 = arith.constant 0 : i32
    return %c0_i32, %arg0 : i32, i32
  }
  func.func @transform_2(%arg0: i32) -> (i32, i32) {
    %c0_i32 = arith.constant 0 : i32
    %c0_i32_0 = arith.constant 0 : i32
    return %c0_i32, %arg0 : i32, i32
  }
  func.func @transform_3(%arg0: i32) -> (i32, i32) {
    %c0_i32 = arith.constant 0 : i32
    %c0_i32_0 = arith.constant 0 : i32
    return %c0_i32, %arg0 : i32, i32
  }
}

</mosaic_0001>

<bundles_post_ra>
// kernel: impulse_gpt_forward.4
= control target key start
LH: loop header
LB: loop body
LE: loop exit
PB: predicated region body
PF: predicated region fallthrough
CT: control target
= control target key end

     0   :  { %s230_s0 = inlined_call_operand.vmem [shape: s32[32], index: 0, kind: input, shape index: {}]   ;;  %s231_s1 = inlined_call_operand.vmem [shape: f32[512,1,128], index: 1, kind: input, shape index: {}]   ;;  %s232_s2 = inlined_call_operand.vmem [shape: f32[32,1,128], index: 2, kind: output, shape index: {}]  }
   0x1   :  { %s7_s11 = sshll.u32 %s230_s0, 4  ;;  %s8_s11 = int_to_ptr.vmem [resolvable:$true] %s7_s11 }
   0x2   :  { %s183_s12 = scalar_lea.vmem %s8_s11, 16  ;;  %p188_p1 = scmp.lt.s32.totalorder %s8_s11, %s8_s11 }
   0x3   :  { %p184_p0 = scmp.ne.s32.totalorder %s8_s11, %s183_s12  ;;  %p189_p2 = scmp.lt.s32.totalorder %s183_s12, %s183_s12 }
   0x5   :  { %p190_p3 = por %p189_p2, %p188_p1 }
   0x7   :  { %p191_p4 = pnand %p190_p3, %p184_p0 }
   0x9   :  { %194 = shalt.err (!%p191_p4)  }
   0xa   :  { %s205_s13 = smov [#allocation3]  }
   0xb   :  { %10 = dma.vmem_to_smem %s8_s11, 16, %s205_s13, [#allocation2] }
   0xc   :  { %199 = dma.done.wait [#allocation2], 16 }
   0xd   :  { %200 = vsyncadd [#allocation2], 4294967280 }
   0xe   :  { %12 = sfence }
   0xf   :  { %s201_s14 = smov 0  }
  0x10 LB: > { %s167_s15 = sadd.s32 4294967295, %s203_s14   ;;  %p171_p5 = scmp.ge.s32.totalorder %s203_s14, 1  ;;  %s203_s14 = sphi %s201_s14, %s18_s14  }
  0x11   : > { %p96_p6 = scmp.lt.s32.totalorder %s203_s14, 33 }
  0x13   : > { %p97_p7 = pnand %p171_p5, %p96_p6 }
  0x14   : > { %s113_s0 = sld [smem:[#allocation3 + %s167_s15]] (!%p97_p7)  ;;  %p118_p8 = scmp.lt.s32.totalorder (!%p97_p7), %s167_s15, 31 }
  0x15   : > { %100 = sbr.rel (%p97_p7) target bundleno = 32 (0x20), region = 24 }
  0x1a   : > { %p114_p9 = scmp.lt.s32.totalorder (!%p97_p7), %s113_s0, 511 }
  0x1c   : > { %s234_s15 = smov (!%p118_p8, %s167_s15), 31  ;;  %s236_s0 = smov (!%p114_p9, %s113_s0), 511 }
  0x1d   : > { %s120_s18 = scalar_lea.vmem %s232_s2, %s234_s15  ;;  %s116_s21 = scalar_lea.vmem %s231_s1, %s236_s0 }
  0x1e   : > { %v121_v0 = vld [vmem:[%s116_s21] sm:$0x1] }
  0x1f   : > { %122 = vst [vmem:[%s120_s18] sm:$0x1] %v121_v0 }
  0x20 PF: > { %s18_s14 = sadd.s32 1, %s203_s14  }
  0x21   : > { %p15_p10 = scmp.ge.s32.totalorder %s18_s14, 34  }
  0x23   :  { %17 = sbr.rel (!%p15_p10) target bundleno = 16 (0x10), region = 54 }

// kernel: impulse_gpt_forward.7
= control target key start
LH: loop header
LB: loop body
LE: loop exit
PB: predicated region body
PF: predicated region fallthrough
CT: control target
= control target key end

     0   :  { %v458_v2 = vmov 0   ;;  %s595_s0 = inlined_call_operand.vmem [shape: f32[2,128], index: 0, kind: input, shape index: {}]   ;;  %s596_s1 = inlined_call_operand.vmem [shape: bf16[128,512], index: 1, kind: input, shape index: {}]   ;;  %s597_s2 = inlined_call_operand.vmem [shape: f32[1,512], index: 2, kind: input, shape index: {}]   ;;  %s598_s3 = inlined_call_operand.hbm [shape: f32[2,512], index: 3, kind: output, shape index: {}]  }
   0x1   :  { %v386_v0 = vld [vmem:[%s596_s1 + $0x4] ss:$16 sps:$4 sm:$0xff]   ;;  %v388_v1 = vld [vmem:[%s596_s1 + $0xc] ss:$16 sps:$4 sm:$0xff]   ;;  %264 = vmatprep.mubr.bf16.mxu0 %v458_v2  ;;  %305 = vmatprep.mubr.bf16.mxu1 %v458_v2  ;;  %v390_v3 = vld [vmem:[%s596_s1] ss:$16 sps:$4 sm:$0xff]  }
   0x2   :  { %232 = vmatprep.subr.bf16.mxu0 %v386_v0  ;;  %v391_v4 = vld [vmem:[%s596_s1 + $0x8] ss:$16 sps:$4 sm:$0xff]   ;;  %273 = vmatprep.subr.bf16.mxu1 %v388_v1  ;;  %v392_v5 = vld [vmem:[%s596_s1 + $0x24] ss:$16 sps:$4 sm:$0xff]   ;;  %v394_v6 = vld [vmem:[%s596_s1 + $0x2c] ss:$16 sps:$4 sm:$0xff]  }
   0x3   :  { %233 = vmatpush1.bf16.msra.mxu0 %v390_v3  ;;  %274 = vmatpush1.bf16.msra.mxu1 %v391_v4  ;;  %v396_v7 = vld [vmem:[%s596_s1 + $0x20] ss:$16 sps:$4 sm:$0xff]   ;;  %v397_v8 = vld [vmem:[%s596_s1 + $0x28] ss:$16 sps:$4 sm:$0xff]   ;;  %v398_v9 = vld [vmem:[%s596_s1 + $0x44] ss:$16 sps:$4 sm:$0xff]  }
   0x4   :  { %234 = vmatprep.subr.bf16.mxu0 %v392_v5  ;;  %275 = vmatprep.subr.bf16.mxu1 %v394_v6  ;;  %v400_v10 = vld [vmem:[%s596_s1 + $0x4c] ss:$16 sps:$4 sm:$0xff]   ;;  %v402_v11 = vld [vmem:[%s596_s1 + $0x40] ss:$16 sps:$4 sm:$0xff]   ;;  %v403_v12 = vld [vmem:[%s596_s1 + $0x48] ss:$16 sps:$4 sm:$0xff]  }
   0x5   :  { %v404_v13 = vld [vmem:[%s596_s1 + $0x64] ss:$16 sps:$4 sm:$0xff]   ;;  %v406_v14 = vld [vmem:[%s596_s1 + $0x6c] ss:$16 sps:$4 sm:$0xff]   ;;  %v408_v15 = vld [vmem:[%s596_s1 + $0x60] ss:$16 sps:$4 sm:$0xff]  }
   0x6   :  { %v409_v16 = vld [vmem:[%s596_s1 + $0x68] ss:$16 sps:$4 sm:$0xff]   ;;  %v410_v17 = vld [vmem:[%s596_s1 + $0x84] ss:$16 sps:$4 sm:$0xff]   ;;  %v412_v18 = vld [vmem:[%s596_s1 + $0x8c] ss:$16 sps:$4 sm:$0xff]  }
   0x7   :  { %235 = vmatpush1.bf16.msra.mxu0 %v396_v7  ;;  %276 = vmatpush1.bf16.msra.mxu1 %v397_v8  ;;  %v414_v19 = vld [vmem:[%s596_s1 + $0x80] ss:$16 sps:$4 sm:$0xff]   ;;  %v415_v20 = vld [vmem:[%s596_s1 + $0x88] ss:$16 sps:$4 sm:$0xff]   ;;  %v416_v21 = vld [vmem:[%s596_s1 + $0xa4] ss:$16 sps:$4 sm:$0xff]  }
   0x8   :  { %236 = vmatprep.subr.bf16.mxu0 %v398_v9  ;;  %277 = vmatprep.subr.bf16.mxu1 %v400_v10  ;;  %v418_v22 = vld [vmem:[%s596_s1 + $0xac] ss:$16 sps:$4 sm:$0xff]   ;;  %v420_v23 = vld [vmem:[%s596_s1 + $0xa0] ss:$16 sps:$4 sm:$0xff]   ;;  %v421_v24 = vld [vmem:[%s596_s1 + $0xa8] ss:$16 sps:$4 sm:$0xff]  }
   0x9   :  { %v422_v25 = vld [vmem:[%s596_s1 + $0xc4] ss:$16 sps:$4 sm:$0xff]   ;;  %v424_v26 = vld [vmem:[%s596_s1 + $0xcc] ss:$16 sps:$4 sm:$0xff]  }
   0xb   :  { %237 = vmatpush1.bf16.msra.mxu0 %v402_v11  ;;  %278 = vmatpush1.bf16.msra.mxu1 %v403_v12 }
   0xc   :  { %238 = vmatprep.subr.bf16.mxu0 %v404_v13  ;;  %279 = vmatprep.subr.bf16.mxu1 %v406_v14 }
   0xf   :  { %239 = vmatpush1.bf16.msra.mxu0 %v408_v15  ;;  %280 = vmatpush1.bf16.msra.mxu1 %v409_v16 }
  0x10   :  { %240 = vmatprep.subr.bf16.mxu0 %v410_v17  ;;  %281 = vmatprep.subr.bf16.mxu1 %v412_v18 }
  0x13   :  { %241 = vmatpush1.bf16.msra.mxu0 %v414_v19  ;;  %282 = vmatpush1.bf16.msra.mxu1 %v415_v20 }
  0x14   :  { %242 = vmatprep.subr.bf16.mxu0 %v416_v21  ;;  %283 = vmatprep.subr.bf16.mxu1 %v418_v22 }
  0x15   :  { %8 = vsyncpa [#allocation3], 0  ;;  %v426_v27 = vld [vmem:[%s596_s1 + $0xc0] ss:$16 sps:$4 sm:$0xff]   ;;  %v427_v28 = vld [vmem:[%s596_s1 + $0xc8] ss:$16 sps:$4 sm:$0xff]   ;;  %v52_v35 = vlaneseq }
  0x16   :  { %v428_v29 = vld [vmem:[%s596_s1 + $0xe4] ss:$16 sps:$4 sm:$0xff]   ;;  %v430_v30 = vld [vmem:[%s596_s1 + $0xec] ss:$16 sps:$4 sm:$0xff]   ;;  %v432_v31 = vld [vmem:[%s596_s1 + $0xe0] ss:$16 sps:$4 sm:$0xff]  }
  0x17   :  { %243 = vmatpush1.bf16.msra.mxu0 %v420_v23  ;;  %284 = vmatpush1.bf16.msra.mxu1 %v421_v24  ;;  %v433_v32 = vld [vmem:[%s596_s1 + $0xe8] ss:$16 sps:$4 sm:$0xff]   ;;  %v16_v33 = vld [vmem:[%s595_s0] sm:$0x3]  ;;  %v53_v36 = vshrl.u32 %v52_v35, 7  ;;  %s460_s0 = smov [#allocation2]  }
  0x18   :  { %244 = vmatprep.subr.bf16.mxu0 %v422_v25  ;;  %285 = vmatprep.subr.bf16.mxu1 %v424_v26  ;;  %v17_v34 = vpack.c.bf16 %v16_v33, %v16_v33  ;;  %v50_v39 = vld [vmem:[%s597_s2] sm:$0xf]  ;;  %v459_v42 = vmov 1983009808   ;;  %s343_s1 = sshll.u32 %s460_s0, 4  ;;  %s344_s1 = int_to_ptr.vmem [resolvable:$true] %s343_s1 }
  0x19   :  { %v54_v37 = vsub.s32 0, %v53_v36  ;;  %v62_v38 = vsub.s32 2, %v53_v36  ;;  %v58_v40 = vsub.s32 1, %v53_v36  ;;  %v66_v41 = vsub.s32 3, %v53_v36  ;;  %s434_s2 = scalar_lea.vmem %s344_s1, 128  ;;  %p439_p1 = scmp.lt.s32.totalorder %s344_s1, %s344_s1 }
  0x1a   :  { %v321_v43 = vunpack.c.l.s4 %v459_v42  ;;  %p435_p0 = scmp.ne.s32.totalorder %s344_s1, %s434_s2  ;;  %p440_p2 = scmp.lt.s32.totalorder %s434_s2, %s434_s2 }
  0x1b   :  { %245 = vmatpush1.bf16.msra.mxu0 %v426_v27  ;;  %286 = vmatpush1.bf16.msra.mxu1 %v427_v28  ;;  %v55_v44 = vrot.slane %v50_v39, %v54_v37  ;;  %v63_v45 = vrot.slane %v50_v39, %v62_v38  ;;  %v59_v46 = vrot.slane %v50_v39, %v58_v40 }
  0x1c   :  { %246 = vmatprep.subr.bf16.mxu0 %v428_v29  ;;  %287 = vmatprep.subr.bf16.mxu1 %v430_v30  ;;  %v67_v47 = vrot.slane %v50_v39, %v66_v41  ;;  %v322_v48 = vunpack.c.0.s8 %v321_v43  ;;  %p441_p3 = por %p440_p2, %p439_p1 }
  0x1e   :  { %v325_v59 = vsub.s32 %v322_v48, %v53_v36  ;;  %p442_p4 = pnand %p441_p3, %p435_p0 }
  0x1f   :  { %247 = vmatpush1.bf16.msra.mxu0 %v432_v31  ;;  %288 = vmatpush1.bf16.msra.mxu1 %v433_v32 }
  0x22   :  { %265 = vmatmul.mubr.bf16.vlgmr.msra.gmra.mrb[0].mxu0 %v17_v34  ;;  %306 = vmatmul.mubr.bf16.vlgmr.msra.gmra.mrb[0].mxu1 %v17_v34 }
  0xf5   :  { %v266_v49 = vpop.f32.mrb[0].mxu0  ;;  %v307_v50 = vpop.f32.mrb[0].mxu1 }
  0xf6   :  { %v267_v51 = vadd.f32 %v266_v49, %v55_v44  ;;  %v308_v52 = vadd.f32 %v307_v50, %v63_v45  ;;  %v268_v53 = vpop.f32.mrb[1].mxu0  ;;  %v309_v54 = vpop.f32.mrb[1].mxu1 }
  0xf7   :  { %v269_v55 = vadd.f32 %v268_v53, %v59_v46  ;;  %v310_v56 = vadd.f32 %v309_v54, %v67_v47  ;;  %v270_v57 = vpop.f32.mrb[2].mxu0  ;;  %v311_v58 = vpop.f32.mrb[2].mxu1 }
  0xf8   :  { %v271_v60 = vpop.f32.mrb[3].mxu0  ;;  %v312_v61 = vpop.f32.mrb[3].mxu1 }
  0xf9   :  { %v318_v62 = vcombine.low %v267_v51, %v269_v55  ;;  %v319_v63 = vcombine.low %v308_v52, %v310_v56 }
  0xfb   :  { %v326_v0 = vrot.slane %v318_v62, %v325_v59  ;;  %v333_v1 = vrot.slane %v319_v63, %v325_v59 }
  0xfd   :  { %v334_v2 = vcombine.low %v326_v0, %v333_v1 }
  0xff   :  { %336 = vst [vmem:[#allocation2] sm:$0xff] %v334_v2 }
 0x100   :  { %445 = shalt.err (!%p442_p4)
}
 0x101   :  { %s446_s28 = scalar_lea.hbm %s598_s3, 128 }
 0x102   :  { %p447_p5 = scmp.ne.s32.totalorder %s598_s3, %s446_s28  ;;  %p450_p6 = scmp.lt.u32.totalorder %s446_s28, %s598_s3 }
 0x104   :  { %p452_p7 = pnand %p450_p6, %p447_p5 }
 0x106   :  { %455 = shalt.err (!%p452_p7)
}
 0x107   :  { %346 = dma.vmem_to_hbm [thread:$0]  %s344_s1, 128, %s598_s3, [#allocation3]  }
 0x108   :  { %456 = dma.done.wait [#allocation3], 128  }
 0x109   :  { %457 = vsyncadd [#allocation3], 4294967168 }
 0x10a   :  { %350 = vsyncpa [#allocation3], 1 }

// kernel: impulse_gpt_forward.5
= control target key start
LH: loop header
LB: loop body
LE: loop exit
PB: predicated region body
PF: predicated region fallthrough
CT: control target
= control target key end

     0   :  { %v3306_v1 = vmov 0   ;;  %s3307_s16 = smov 1   ;;  %s3308_s17 = smov 127   ;;  %v3309_v36 = vmov 0.0   ;;  %vm3310_vm0 = vmmov 0   ;;  %vm543_vm1 = vcmask 261120   ;;  %s4166_s1 = inlined_call_operand.vmem [shape: bf16[128,384], index: 1, kind: input, shape index: {}]   ;;  %s4167_s0 = inlined_call_operand.vmem [shape: f32[2,16,128], index: 0, kind: input, shape index: {}]   ;;  %s4168_s8 = inlined_call_operand.vmem [shape: f32[32,128], index: 8, kind: input, shape index: {}]   ;;  %s4169_s9 = inlined_call_operand.vmem [shape: f32[32,128], index: 9, kind: input, shape index: {}]   ;;  %s4170_s10 = inlined_call_operand.vmem [shape: f32[32,128], index: 10, kind: input, shape index: {}]   ;;  %s4171_s2 = inlined_call_operand.vmem [shape: bf16[128,128], index: 2, kind: input, shape index: {}]   ;;  %s4172_s3 = inlined_call_operand.vmem [shape: f32[1,128], index: 3, kind: input, shape index: {}]   ;;  %s4173_s4 = inlined_call_operand.vmem [shape: bf16[128,512], index: 4, kind: input, shape index: {}]   ;;  %s4174_s6 = inlined_call_operand.vmem [shape: bf16[512,128], index: 6, kind: input, shape index: {}]   ;;  %s4175_s5 = inlined_call_operand.vmem [shape: f32[1,512], index: 5, kind: input, shape index: {}]   ;;  %s4176_s7 = inlined_call_operand.vmem [shape: f32[1,128], index: 7, kind: input, shape index: {}]   ;;  %s4177_s11 = inlined_call_operand.vmem [shape: f32[2,16,128], index: 11, kind: output, shape index: {}]  }
   0x1   :  { %v3070_v0 = vld [vmem:[%s4166_s1 + $0x4] ss:$12 sps:$4 sm:$0xff]   ;;  %241 = vmatprep.mubr.bf16.mxu0 %v3306_v1  ;;  %v3072_v2 = vld [vmem:[%s4166_s1] ss:$12 sps:$4 sm:$0xff]   ;;  %v3073_v3 = vld [vmem:[%s4166_s1 + $0x1c] ss:$12 sps:$4 sm:$0xff]  }
   0x2   :  { %209 = vmatprep.subr.bf16.mxu0 %v3070_v0  ;;  %v3075_v4 = vld [vmem:[%s4166_s1 + $0x18] ss:$12 sps:$4 sm:$0xff]   ;;  %v3076_v5 = vld [vmem:[%s4166_s1 + $0x34] ss:$12 sps:$4 sm:$0xff]   ;;  %v3078_v6 = vld [vmem:[%s4166_s1 + $0x30] ss:$12 sps:$4 sm:$0xff]  }
   0x3   :  { %210 = vmatpush1.bf16.msra.mxu0 %v3072_v2  ;;  %v3079_v7 = vld [vmem:[%s4166_s1 + $0x4c] ss:$12 sps:$4 sm:$0xff]   ;;  %v43_v8 = vld [vmem:[%s4167_s0] sm:$0xff]  ;;  %v3081_v9 = vld [vmem:[%s4166_s1 + $0x48] ss:$12 sps:$4 sm:$0xff]   ;;  %vm947_vm3 = vcmask 130048  }
   0x4   :  { %211 = vmatprep.subr.bf16.mxu0 %v3073_v3  ;;  %v3082_v10 = vld [vmem:[%s4166_s1 + $0x64] ss:$12 sps:$4 sm:$0xff]   ;;  %v44_v11 = vld [vmem:[%s4167_s0 + $0x8] sm:$0xff]  ;;  %v3088_v16 = vld [vmem:[%s4166_s1 + $0x94] ss:$12 sps:$4 sm:$0xff]   ;;  %vm1536_vm5 = vcmask 523264  }
   0x5   :  { %v47_v12 = vpack.c.bf16 %v44_v11, %v43_v8  ;;  %v3084_v13 = vld [vmem:[%s4166_s1 + $0x60] ss:$12 sps:$4 sm:$0xff]   ;;  %v3085_v14 = vld [vmem:[%s4166_s1 + $0x7c] ss:$12 sps:$4 sm:$0xff]   ;;  %v3087_v15 = vld [vmem:[%s4166_s1 + $0x78] ss:$12 sps:$4 sm:$0xff]  }
   0x6   :  { %v3090_v17 = vld [vmem:[%s4166_s1 + $0x90] ss:$12 sps:$4 sm:$0xff]   ;;  %v3091_v18 = vld [vmem:[%s4166_s1 + $0xac] ss:$12 sps:$4 sm:$0xff]   ;;  %v3093_v19 = vld [vmem:[%s4166_s1 + $0xa8] ss:$12 sps:$4 sm:$0xff]  }
   0x7   :  { %212 = vmatpush1.bf16.msra.mxu0 %v3075_v4  ;;  %2822 = vmatprep.mubr.bf16.mxu1 %v47_v12  ;;  %v45_v20 = vld [vmem:[%s4167_s0 + $0x10] sm:$0xff]  ;;  %v46_v21 = vld [vmem:[%s4167_s0 + $0x18] sm:$0xff]  ;;  %v3095_v24 = vld [vmem:[%s4166_s1 + $0x20] ss:$12 sps:$4 sm:$0xff]   ;;  %vm1541_vm6 = vcmask 785408  }
   0x8   :  { %213 = vmatprep.subr.bf16.mxu0 %v3076_v5  ;;  %v48_v22 = vpack.c.bf16 %v46_v21, %v45_v20  ;;  %v3094_v23 = vld [vmem:[%s4166_s1 + $0x8] ss:$12 sps:$4 sm:$0xff]   ;;  %v3096_v25 = vld [vmem:[%s4166_s1 + $0x38] ss:$12 sps:$4 sm:$0xff]   ;;  %v3097_v26 = vld [vmem:[%s4166_s1 + $0x50] ss:$12 sps:$4 sm:$0xff]  }
   0x9   :  { %2806 = vmatprep.subr.bf16.mxu1 %v3094_v23  ;;  %v3098_v27 = vld [vmem:[%s4166_s1 + $0x68] ss:$12 sps:$4 sm:$0xff]   ;;  %v3099_v28 = vld [vmem:[%s4166_s1 + $0x80] ss:$12 sps:$4 sm:$0xff]   ;;  %v3100_v29 = vld [vmem:[%s4166_s1 + $0x98] ss:$12 sps:$4 sm:$0xff]  }
   0xa   :  { %2807 = vmatpush3.bf16.msra.mxu1 %v3094_v23  ;;  %v3101_v30 = vld [vmem:[%s4166_s1 + $0xb0] ss:$12 sps:$4 sm:$0xff]   ;;  %v311_v45 = vld [vmem:[%s4168_s8] sm:$0xff]  ;;  %v312_v46 = vld [vmem:[%s4168_s8 + $0x8] sm:$0xff] }
   0xb   :  { %214 = vmatpush1.bf16.msra.mxu0 %v3078_v6  ;;  %2808 = vmatprep.subr.bf16.mxu1 %v3095_v24  ;;  %v315_v47 = vld [vmem:[%s4169_s9] sm:$0xff]  ;;  %v316_v51 = vld [vmem:[%s4169_s9 + $0x8] sm:$0xff]  ;;  %v317_v62 = vld [vmem:[%s4169_s9 + $0x10] sm:$0xff] }
   0xc   :  { %215 = vmatprep.subr.bf16.mxu0 %v3079_v7  ;;  %v319_v48 = vld [vmem:[%s4170_s10] sm:$0xff]  ;;  %v320_v52 = vld [vmem:[%s4170_s10 + $0x8] sm:$0xff]  ;;  %v313_v0 = vld [vmem:[%s4168_s8 + $0x10] sm:$0xff] }
   0xd   :  { %v314_v4 = vld [vmem:[%s4168_s8 + $0x18] sm:$0xff]  ;;  %v321_v7 = vld [vmem:[%s4170_s10 + $0x10] sm:$0xff]  ;;  %s3311_s8 = smov 96  }
   0xe   :  { %2809 = vmatpush3.bf16.msra.mxu1 %v3095_v24  ;;  %v318_v5 = vld [vmem:[%s4169_s9 + $0x18] sm:$0xff]  ;;  %s3312_s9 = smov 64  }
   0xf   :  { %216 = vmatpush1.bf16.msra.mxu0 %v3081_v9  ;;  %2810 = vmatprep.subr.bf16.mxu1 %v3096_v25 }
  0x10   :  { %217 = vmatprep.subr.bf16.mxu0 %v3082_v10 }
  0x12   :  { %2811 = vmatpush3.bf16.msra.mxu1 %v3096_v25 }
  0x13   :  { %218 = vmatpush1.bf16.msra.mxu0 %v3084_v13  ;;  %2812 = vmatprep.subr.bf16.mxu1 %v3097_v26 }
  0x14   :  { %219 = vmatprep.subr.bf16.mxu0 %v3085_v14  ;;  %v322_v14 = vld [vmem:[%s4170_s10 + $0x18] sm:$0xff]  ;;  %s3313_s10 = smov 32  }
  0x16   :  { %2813 = vmatpush3.bf16.msra.mxu1 %v3097_v26 }
  0x17   :  { %220 = vmatpush1.bf16.msra.mxu0 %v3087_v15  ;;  %2814 = vmatprep.subr.bf16.mxu1 %v3098_v27 }
  0x18   :  { %221 = vmatprep.subr.bf16.mxu0 %v3088_v16 }
  0x1a   :  { %2815 = vmatpush3.bf16.msra.mxu1 %v3098_v27 }
  0x1b   :  { %222 = vmatpush1.bf16.msra.mxu0 %v3090_v17  ;;  %2816 = vmatprep.subr.bf16.mxu1 %v3099_v28 }
  0x1c   :  { %223 = vmatprep.subr.bf16.mxu0 %v3091_v18 }
  0x1e   :  { %2817 = vmatpush3.bf16.msra.mxu1 %v3099_v28 }
  0x1f   :  { %224 = vmatpush1.bf16.msra.mxu0 %v3093_v19  ;;  %2818 = vmatprep.subr.bf16.mxu1 %v3100_v29 }
  0x20   :  { %2826 = vmatprep.subr.bf16.mxu0 %v3309_v36 }
  0x22   :  { %242 = vmatmul.mubr.bf16.vlgmr.msra.gmra.mrb[0].mxu0 %v47_v12  ;;  %2819 = vmatpush3.bf16.msra.mxu1 %v3100_v29 }
  0x23   :  { %251 = vmatprep.mubr.bf16.mxu0 %v3306_v1  ;;  %2820 = vmatprep.subr.bf16.mxu1 %v3101_v30 }
  0x26   :  { %2821 = vmatpush3.bf16.msra.mxu1 %v3101_v30 }
  0x27   :  { %2838 = vmatprep.subr.bf16.mxu1 %v3309_v36 }
  0x29   :  { %2823 = vmatmul.mubr.bf16.vlgmr.msra.gmra.mrb[0].mxu1 %v48_v22 }
  0x2a   :  { %252 = vmatmul.mubr.bf16.gmra.mrb[4].mxu0 %v48_v22  ;;  %2840 = vmatprep.mubr.msk.bf16.mxu1 %vm3310_vm0, %v3309_v36 }
  0x2b   :  { %2828 = vmatprep.mubr.msk.bf16.mxu0 %vm3310_vm0, %v3309_v36 }
  0xf5   :  { %v3460_v31 = vpop.f32.mrb[0].mxu0 }
  0xf6   :  { %323 = vrot.lane.b32.xlu0 %v3460_v31, %s3307_s16  ;;  %v245_v32 = vpop.f32.mrb[1].mxu0  ;;  %v339_v19 = vmul.f32 %v311_v45, %v3460_v31 }
  0xf7   :  { %v3463_v33 = vpop.f32.mrb[2].mxu0  ;;  %v379_v54 = vmul.f32 %v311_v45, %v245_v32 }
  0xf8   :  { %325 = vrot.lane.b32.xlu1 %v3463_v33, %s3307_s16  ;;  %v249_v34 = vpop.f32.mrb[3].mxu0  ;;  %v340_v25 = vmul.f32 %v312_v46, %v3463_v33 }
  0xf9   :  { %v380_v55 = vmul.f32 %v312_v46, %v249_v34 }
  0xfa   :  { %363 = vrot.lane.b32.xlu0 %v245_v32, %s3307_s16 }
  0xfc   :  { %373 = vrot.lane.b32.xlu1 %v249_v34, %s3308_s17 }
  0xfd   :  { %v3466_v35 = vpop.f32.mrb[4].mxu0 }
  0xfe   :  { %371 = vrot.lane.b32.xlu0 %v245_v32, %s3308_s17  ;;  %v255_v37 = vpop.f32.mrb[5].mxu0 }
  0xff   :  { %v3470_v38 = vpop.f32.mrb[6].mxu0  ;;  %v381_v15 = vmul.f32 %v313_v0, %v255_v37 }
 0x100   :  { %367 = vrot.lane.b32.xlu1 %v255_v37, %s3307_s16  ;;  %v259_v39 = vpop.f32.mrb[7].mxu0 }
 0x101   :  { %v382_v16 = vmul.f32 %v314_v4, %v259_v39 }
 0x102   :  { %365 = vrot.lane.b32.xlu0 %v249_v34, %s3307_s16  ;;  %v341_v34 = vmul.f32 %v313_v0, %v3466_v35 }
 0x104   :  { %329 = vrot.lane.b32.xlu1 %v3470_v38, %s3307_s16 }
 0x106   :  { %327 = vrot.lane.b32.xlu0 %v3466_v35, %s3307_s16 }
 0x108   :  { %369 = vrot.lane.b32.xlu1 %v259_v39, %s3307_s16 }
 0x10a   :  { %375 = vrot.lane.b32.xlu0 %v255_v37, %s3308_s17 }
 0x10c   :  { %377 = vrot.lane.b32.xlu1 %v259_v39, %s3308_s17 }
 0x10e   :  { %331 = vrot.lane.b32.xlu0 %v3460_v31, %s3308_s17 }
 0x110   :  { %333 = vrot.lane.b32.xlu1 %v3463_v33, %s3308_s17 }
 0x112   :  { %335 = vrot.lane.b32.xlu0 %v3466_v35, %s3308_s17 }
 0x114   :  { %337 = vrot.lane.b32.xlu1 %v3470_v38, %s3308_s17 }
 0x168   :  { %v324_v40 = vpop.permute.xlu0 %323 }
 0x169   :  { %v343_v12 = vmul.f32 %v324_v40, %v315_v47 }
 0x16a   :  { %v326_v41 = vpop.permute.xlu1 %325 }
 0x16b   :  { %v344_v20 = vmul.f32 %v326_v41, %v316_v51  ;;  %v347_v26 = vadd.f32 %v343_v12, %v339_v19 }
 0x16c   :  { %v364_v42 = vpop.permute.xlu0 %363 }
 0x16d   :  { %v383_v50 = vmul.f32 %v364_v42, %v315_v47  ;;  %v348_v37 = vadd.f32 %v344_v20, %v340_v25 }
 0x16e   :  { %v374_v43 = vpop.permute.xlu1 %373 }
 0x16f   :  { %v387_v59 = vadd.f32 %v383_v50, %v379_v54  ;;  %v392_v60 = vmul.f32 %v374_v43, %v320_v52 }
 0x170   :  { %v372_v44 = vpop.permute.xlu0 %371 }
 0x171   :  { %v391_v56 = vmul.f32 %v372_v44, %v319_v48  ;;  %v342_v44 = vmul.f32 %v314_v4, %v3470_v38 }
 0x172   :  { %v368_v49 = vpop.permute.xlu1 %367 }
 0x173   :  { %v395_v2 = vadd.f32 %v391_v56, %v387_v59  ;;  %v385_v8 = vmul.f32 %v368_v49, %v317_v62 }
 0x174   :  { %v366_v53 = vpop.permute.xlu0 %365 }
 0x175   :  { %v384_v57 = vmul.f32 %v366_v53, %v316_v51  ;;  %v389_v22 = vadd.f32 %v385_v8, %v381_v15 }
 0x176   :  { %v330_v58 = vpop.permute.xlu1 %329 }
 0x177   :  { %v388_v61 = vadd.f32 %v384_v57, %v380_v55  ;;  %v346_v31 = vmul.f32 %v330_v58, %v318_v5 }
 0x178   :  { %v328_v63 = vpop.permute.xlu0 %327 }
 0x179   :  { %v396_v3 = vadd.f32 %v392_v60, %v388_v61  ;;  %v345_v28 = vmul.f32 %v328_v63, %v317_v62  ;;  %v350_v49 = vadd.f32 %v346_v31, %v342_v44  ;;  %v3546_v60 = vpop.f32.mrb[0].mxu1 }
 0x17a   :  { %v370_v6 = vpop.permute.xlu1 %369  ;;  %v3549_v61 = vpop.f32.mrb[1].mxu1 }
 0x17b   :  { %v386_v9 = vmul.f32 %v370_v6, %v318_v5  ;;  %v3515_v10 = vpack.i.bf16 %v396_v3, %v395_v2  ;;  %v487_v11 = vpack.c.bf16 %v396_v3, %v395_v2  ;;  %v349_v47 = vadd.f32 %v345_v28, %v341_v34  ;;  %v3551_v62 = vpop.f32.mrb[2].mxu1 }
 0x17c   :  { %v376_v13 = vpop.permute.xlu0 %375  ;;  %v536_v63 = vpack.c.bf16 %v3551_v62, %v3546_v60  ;;  %v3556_v0 = vpop.f32.mrb[3].mxu1  ;;  %v3560_v2 = vpack.i.bf16 %v3551_v62, %v3546_v60 }
 0x17d   :  { %v393_v17 = vmul.f32 %v376_v13, %v321_v7  ;;  %2951 = vrot.lane.b32.xlu0 %v3515_v10, %s3311_s8  ;;  %v548_v18 = vsel %vm543_vm1, %v487_v11, 0  ;;  %v390_v23 = vadd.f32 %v386_v9, %v382_v16  ;;  %v535_v3 = vpack.c.bf16 %v3556_v0, %v3549_v61 }
 0x17e   :  { %2827 = vmatpush3.bf16.xpose.msra.mxu0 %v548_v18  ;;  %v378_v21 = vpop.permute.xlu1 %377  ;;  %v3566_v4 = vpack.i.bf16 %v3556_v0, %v3549_v61 }
 0x17f   :  { %v394_v24 = vmul.f32 %v378_v21, %v322_v14  ;;  %2832 = vmatprep.subr.bf16.mxu0 %v3309_v36  ;;  %v397_v29 = vadd.f32 %v393_v17, %v389_v22 }
 0x180   :  { %v332_v27 = vpop.permute.xlu0 %331 }
 0x181   :  { %v398_v30 = vadd.f32 %v394_v24, %v390_v23  ;;  %v351_v32 = vmul.f32 %v332_v27, %v319_v48 }
 0x182   :  { %v334_v39 = vpop.permute.xlu1 %333 }
 0x183   :  { %v355_v40 = vadd.f32 %v351_v32, %v347_v26  ;;  %v352_v41 = vmul.f32 %v334_v39, %v320_v52  ;;  %v2960_v42 = vpack.i.bf16 %v398_v30, %v397_v29  ;;  %v488_v43 = vpack.c.bf16 %v398_v30, %v397_v29 }
 0x184   :  { %v336_v45 = vpop.permute.xlu0 %335 }
 0x185   :  { %v356_v33 = vadd.f32 %v352_v41, %v348_v37  ;;  %v353_v46 = vmul.f32 %v336_v45, %v321_v7  ;;  %2961 = vrot.lane.b32.xlu1 %v2960_v42, %s3311_s8  ;;  %v359_v48 = vmul.f32 0.17677669, %v355_v40  ;;  %v595_v57 = vsel %vm543_vm1, %v488_v43, 0 }
 0x186   :  { %v338_v50 = vpop.permute.xlu1 %337 }
 0x187   :  { %v360_v51 = vmul.f32 0.17677669, %v356_v33  ;;  %v357_v35 = vadd.f32 %v353_v46, %v349_v47  ;;  %v354_v53 = vmul.f32 %v338_v50, %v322_v14 }
 0x189   :  { %v439_v54 = vpack.c.bf16 %v360_v51, %v359_v48  ;;  %v358_v55 = vadd.f32 %v354_v53, %v350_v49  ;;  %2966 = vrot.lane.b32.xlu1 %v3515_v10, %s3312_s9  ;;  %v2955_v52 = vpack.i.bf16 %v360_v51, %v359_v48  ;;  %v361_v38 = vmul.f32 0.17677669, %v357_v35 }
 0x18b   :  { %v362_v56 = vmul.f32 0.17677669, %v358_v55  ;;  %2956 = vrot.lane.b32.xlu0 %v2955_v52, %s3311_s8  ;;  %2829 = vmatmul.mubr.msk.bf16.vlgmr.msra.gmra.mrb[8].mxu0 %vm543_vm1, %v439_v54 }
 0x18c   :  { %2833 = vmatpush3.bf16.xpose.msra.mxu0 %v595_v57  ;;  %2834 = vmatprep.mubr.msk.bf16.mxu0 %vm3310_vm0, %v3309_v36 }
 0x18d   :  { %v440_v58 = vpack.c.bf16 %v362_v56, %v361_v38  ;;  %2971 = vrot.lane.b32.xlu1 %v2960_v42, %s3312_s9  ;;  %v2975_v59 = vpack.i.bf16 %v362_v56, %v361_v38  ;;  %2844 = vmatprep.subr.bf16.mxu0 %v3309_v36 }
 0x18f   :  { %2976 = vrot.lane.b32.xlu0 %v2975_v59, %s3311_s8 }
 0x191   :  { %2986 = vrot.lane.b32.xlu1 %v3515_v10, %s3313_s10 }
 0x193   :  { %2981 = vrot.lane.b32.xlu0 %v2955_v52, %s3312_s9  ;;  %2835 = vmatmul.mubr.msk.bf16.vlgmr.msra.gmra.mrb[12].mxu0 %vm543_vm1, %v440_v58 }
 0x194   :  { %2846 = vmatprep.mubr.msk.bf16.mxu0 %vm3310_vm0, %v3309_v36 }
 0x195   :  { %2996 = vrot.lane.b32.xlu1 %v2960_v42, %s3313_s10 }
 0x197   :  { %2991 = vrot.lane.b32.xlu0 %v2975_v59, %s3312_s9 }
 0x199   :  { %3006 = vrot.lane.b32.xlu1 %v2975_v59, %s3313_s10 }
 0x19b   :  { %3001 = vrot.lane.b32.xlu0 %v2955_v52, %s3313_s10 }
 0x19d   :  { %3011 = vrot.lane.b32.xlu1 %v3566_v4, %s3311_s8 }
 0x19f   :  { %3016 = vrot.lane.b32.xlu0 %v3560_v2, %s3311_s8 }
 0x1a1   :  { %3021 = vrot.lane.b32.xlu1 %v3566_v4, %s3312_s9 }
 0x1a5   :  { %3026 = vrot.lane.b32.xlu1 %v3560_v2, %s3312_s9 }
 0x1ef   :  { %v2952_v5 = vpop.permute.xlu0 %2951 }
 0x1f0   :  { %v2954_v6 = vunpack.i.h.bf16 %v2952_v5  ;;  %v2953_v7 = vunpack.i.l.bf16 %v2952_v5  ;;  %v920_v5 = vlaneseq }
 0x1f2   :  { %v489_v8 = vpack.c.bf16 %v2954_v6, %v2953_v7  ;;  %v3615_v61 = vshrl.u32 %v920_v5, 7  ;;  %v924_v0 = vand.u32 127, %v920_v5 }
 0x1f4   :  { %v642_v9 = vsel %vm543_vm1, %v489_v8, 0  ;;  %vm3619_vm2 = vcmp.le.s32.totalorder %v924_v0, %v3615_v61 }
 0x1f5   :  { %2839 = vmatpush3.bf16.xpose.msra.mxu1 %v642_v9 }
 0x1f6   :  { %2850 = vmatprep.subr.bf16.mxu1 %v3309_v36 }
 0x1f7   :  { %v2962_v10 = vpop.permute.xlu1 %2961 }
 0x1f8   :  { %v2964_v11 = vunpack.i.h.bf16 %v2962_v10  ;;  %v2963_v12 = vunpack.i.l.bf16 %v2962_v10 }
 0x1fa   :  { %v490_v13 = vpack.c.bf16 %v2964_v11, %v2963_v12 }
 0x1fb   :  { %v2967_v14 = vpop.permute.xlu1 %2966 }
 0x1fc   :  { %v2969_v15 = vunpack.i.h.bf16 %v2967_v14  ;;  %v2968_v16 = vunpack.i.l.bf16 %v2967_v14  ;;  %v689_v17 = vsel %vm543_vm1, %v490_v13, 0 }
 0x1fd   :  { %v2957_v18 = vpop.permute.xlu0 %2956  ;;  %2845 = vmatpush3.bf16.xpose.msra.mxu0 %v689_v17 }
 0x1fe   :  { %v491_v19 = vpack.c.bf16 %v2969_v15, %v2968_v16  ;;  %v2959_v20 = vunpack.i.h.bf16 %v2957_v18  ;;  %v2958_v21 = vunpack.i.l.bf16 %v2957_v18  ;;  %2856 = vmatprep.subr.bf16.mxu0 %v3309_v36 }
 0x1ff   :  { %v2972_v22 = vpop.permute.xlu1 %2971 }
 0x200   :  { %v441_v23 = vpack.c.bf16 %v2959_v20, %v2958_v21  ;;  %v2974_v24 = vunpack.i.h.bf16 %v2972_v22  ;;  %v2973_v25 = vunpack.i.l.bf16 %v2972_v22  ;;  %v736_v26 = vsel %vm543_vm1, %v491_v19, 0 }
 0x201   :  { %v2977_v27 = vpop.permute.xlu0 %2976 }
 0x202   :  { %v492_v28 = vpack.c.bf16 %v2974_v24, %v2973_v25  ;;  %v2979_v29 = vunpack.i.h.bf16 %v2977_v27  ;;  %v2978_v30 = vunpack.i.l.bf16 %v2977_v27  ;;  %2841 = vmatmul.mubr.msk.bf16.vlgmr.msra.gmra.mrb[4].mxu1 %vm543_vm1, %v441_v23 }
 0x203   :  { %2851 = vmatpush3.bf16.xpose.msra.mxu1 %v736_v26  ;;  %v2987_v32 = vpop.permute.xlu1 %2986  ;;  %2852 = vmatprep.mubr.msk.bf16.mxu1 %vm3310_vm0, %v3309_v36 }
 0x204   :  { %v442_v34 = vpack.c.bf16 %v2979_v29, %v2978_v30  ;;  %v2989_v37 = vunpack.i.h.bf16 %v2987_v32  ;;  %v2988_v31 = vunpack.i.l.bf16 %v2987_v32  ;;  %v783_v39 = vsel %vm543_vm1, %v492_v28, 0  ;;  %2862 = vmatprep.subr.bf16.mxu1 %v3309_v36 }
 0x205   :  { %v2982_v40 = vpop.permute.xlu0 %2981 }
 0x206   :  { %v493_v41 = vpack.c.bf16 %v2989_v37, %v2988_v31  ;;  %v2984_v42 = vunpack.i.h.bf16 %v2982_v40  ;;  %v2983_v43 = vunpack.i.l.bf16 %v2982_v40  ;;  %2847 = vmatmul.mubr.msk.bf16.vlgmr.msra.gmra.mrb[16].mxu0 %vm543_vm1, %v442_v34 }
 0x207   :  { %2857 = vmatpush3.bf16.xpose.msra.mxu0 %v783_v39  ;;  %v2997_v44 = vpop.permute.xlu1 %2996  ;;  %2858 = vmatprep.mubr.msk.bf16.mxu0 %vm3310_vm0, %v3309_v36 }
 0x208   :  { %v443_v45 = vpack.c.bf16 %v2984_v42, %v2983_v43  ;;  %v2999_v47 = vunpack.i.h.bf16 %v2997_v44  ;;  %v2998_v33 = vunpack.i.l.bf16 %v2997_v44  ;;  %v830_v46 = vsel %vm543_vm1, %v493_v41, 0  ;;  %2868 = vmatprep.subr.bf16.mxu0 %v3309_v36 }
 0x209   :  { %v2992_v49 = vpop.permute.xlu0 %2991 }
 0x20a   :  { %v494_v50 = vpack.c.bf16 %v2999_v47, %v2998_v33  ;;  %v2994_v48 = vunpack.i.h.bf16 %v2992_v49  ;;  %v2993_v51 = vunpack.i.l.bf16 %v2992_v49  ;;  %2853 = vmatmul.mubr.msk.bf16.vlgmr.msra.gmra.mrb[8].mxu1 %vm543_vm1, %v443_v45 }
 0x20b   :  { %2863 = vmatpush3.bf16.xpose.msra.mxu1 %v830_v46  ;;  %2864 = vmatprep.mubr.msk.bf16.mxu1 %vm3310_vm0, %v3309_v36  ;;  %v3007_v54 = vpop.permute.xlu1 %3006 }
 0x20c   :  { %v444_v35 = vpack.c.bf16 %v2994_v48, %v2993_v51  ;;  %v877_v53 = vsel %vm543_vm1, %v494_v50, 0  ;;  %2874 = vmatprep.subr.bf16.mxu1 %v3309_v36  ;;  %v3009_v56 = vunpack.i.h.bf16 %v3007_v54  ;;  %v3008_v57 = vunpack.i.l.bf16 %v3007_v54 }
 0x20d   :  { %v3002_v55 = vpop.permute.xlu0 %3001 }
 0x20e   :  { %v3004_v52 = vunpack.i.h.bf16 %v3002_v55  ;;  %v3003_v38 = vunpack.i.l.bf16 %v3002_v55  ;;  %2859 = vmatmul.mubr.msk.bf16.vlgmr.msra.gmra.mrb[20].mxu0 %vm543_vm1, %v444_v35  ;;  %v446_v59 = vpack.c.bf16 %v3009_v56, %v3008_v57 }
 0x20f   :  { %2869 = vmatpush3.bf16.xpose.msra.mxu0 %v877_v53  ;;  %2870 = vmatprep.mubr.msk.bf16.mxu0 %vm3310_vm0, %v3309_v36  ;;  %v3012_v44 = vpop.permute.xlu1 %3011 }
 0x210   :  { %v445_v58 = vpack.c.bf16 %v3004_v52, %v3003_v38  ;;  %2880 = vmatprep.subr.bf16.mxu0 %v3309_v36 }
 0x212   :  { %2865 = vmatmul.mubr.msk.bf16.vlgmr.msra.gmra.mrb[12].mxu1 %vm543_vm1, %v445_v58 }
 0x213   :  { %2875 = vmatpush3.bf16.msra.mxu1 %v535_v3  ;;  %2876 = vmatprep.mubr.msk.bf16.mxu1 %vm3310_vm0, %v3309_v36  ;;  %v922_v3 = vadd.s32 8, %v3615_v61  ;;  %v3697_v52 = vpop.permute.xlu1 %3021 }
 0x214   :  { %2886 = vmatprep.subr.bf16.mxu1 %v3309_v36 }
 0x215   :  { %vm3623_vm4 = vcmp.le.s32.totalorder %v924_v0, %v922_v3 }
 0x216   :  { %2871 = vmatmul.mubr.msk.bf16.vlgmr.msra.gmra.mrb[24].mxu0 %vm543_vm1, %v446_v59 }
 0x217   :  { %2881 = vmatpush3.bf16.msra.mxu0 %v536_v63  ;;  %2882 = vmatprep.mubr.msk.bf16.mxu0 %vm3310_vm0, %v3309_v36 }
 0x218   :  { %2892 = vmatprep.subr.bf16.mxu0 %v3309_v36 }
 0x25e   :  { %v584_v7 = vpop.f32.mrb[8].mxu0 }
 0x25f   :  { %v3629_v62 = vsel %vm3619_vm2, %v584_v7, -inf  ;;  %v2830_v63 = vpop.f32.mrb[9].mxu0  ;;  %v3017_v7 = vpop.permute.xlu0 %3016 }
 0x260   :  { %v587_v8 = vpop.f32.mrb[10].mxu0  ;;  %v948_v9 = vsel %vm947_vm3, %v3629_v62, -inf }
 0x261   :  { %v3635_v10 = vsel %vm3623_vm4, %v587_v8, -inf  ;;  %v2831_v11 = vpop.f32.mrb[11].mxu0  ;;  %949 = vmax.xlane.f32.xlu0 %v948_v9 }
 0x262   :  { %v951_v12 = vsel %vm947_vm3, %v3635_v10, -inf }
 0x263   :  { %952 = vmax.xlane.f32.xlu1 %v951_v12  ;;  %v3717_v12 = vpop.permute.xlu1 %3026 }
 0x266   :  { %v631_v13 = vpop.f32.mrb[12].mxu0 }
 0x267   :  { %v3641_v14 = vsel %vm3619_vm2, %v631_v13, -inf  ;;  %v2836_v15 = vpop.f32.mrb[13].mxu0 }
 0x268   :  { %v634_v16 = vpop.f32.mrb[14].mxu0  ;;  %v954_v17 = vsel %vm947_vm3, %v3641_v14, -inf }
 0x269   :  { %v3647_v18 = vsel %vm3623_vm4, %v634_v16, -inf  ;;  %955 = vmax.xlane.f32.xlu0 %v954_v17  ;;  %v2837_v19 = vpop.f32.mrb[15].mxu0 }
 0x26a   :  { %v957_v20 = vsel %vm947_vm3, %v3647_v18, -inf }
 0x26d   :  { %958 = vmax.xlane.f32.xlu0 %v957_v20 }
 0x2d5   :  { %v678_v21 = vpop.f32.mrb[4].mxu1 }
 0x2d6   :  { %v3653_v22 = vsel %vm3619_vm2, %v678_v21, -inf  ;;  %v2842_v23 = vpop.f32.mrb[5].mxu1 }
 0x2d7   :  { %v681_v24 = vpop.f32.mrb[6].mxu1  ;;  %v960_v25 = vsel %vm947_vm3, %v3653_v22, -inf }
 0x2d8   :  { %v3659_v26 = vsel %vm3623_vm4, %v681_v24, -inf  ;;  %v2843_v27 = vpop.f32.mrb[7].mxu1  ;;  %961 = vmax.xlane.f32.xlu1 %v960_v25 }
 0x2d9   :  { %v725_v28 = vpop.f32.mrb[16].mxu0  ;;  %v963_v29 = vsel %vm947_vm3, %v3659_v26, -inf }
 0x2da   :  { %v3665_v30 = vsel %vm3619_vm2, %v725_v28, -inf  ;;  %964 = vmax.xlane.f32.xlu0 %v963_v29  ;;  %v2848_v32 = vpop.f32.mrb[17].mxu0 }
 0x2db   :  { %v728_v34 = vpop.f32.mrb[18].mxu0  ;;  %v966_v37 = vsel %vm947_vm3, %v3665_v30, -inf  ;;  %v3014_v32 = vunpack.i.h.bf16 %v3012_v44 }
 0x2dc   :  { %v3671_v31 = vsel %vm3623_vm4, %v728_v34, -inf  ;;  %967 = vmax.xlane.f32.xlu1 %v966_v37  ;;  %v2849_v39 = vpop.f32.mrb[19].mxu0  ;;  %v3013_v34 = vunpack.i.l.bf16 %v3012_v44 }
 0x2dd   :  { %v772_v40 = vpop.f32.mrb[8].mxu1  ;;  %v969_v41 = vsel %vm947_vm3, %v3671_v31, -inf }
 0x2de   :  { %v3677_v42 = vsel %vm3619_vm2, %v772_v40, -inf  ;;  %v2854_v43 = vpop.f32.mrb[9].mxu1  ;;  %970 = vmax.xlane.f32.xlu0 %v969_v41  ;;  %v537_v40 = vpack.c.bf16 %v3014_v32, %v3013_v34 }
 0x2df   :  { %v775_v45 = vpop.f32.mrb[10].mxu1  ;;  %v972_v47 = vsel %vm947_vm3, %v3677_v42, -inf }
 0x2e0   :  { %v3683_v33 = vsel %vm3623_vm4, %v775_v45, -inf  ;;  %v2855_v46 = vpop.f32.mrb[11].mxu1  ;;  %973 = vmax.xlane.f32.xlu1 %v972_v47 }
 0x2e1   :  { %v819_v49 = vpop.f32.mrb[20].mxu0  ;;  %v975_v50 = vsel %vm947_vm3, %v3683_v33, -inf }
 0x2e2   :  { %v3689_v48 = vsel %vm3619_vm2, %v819_v49, -inf  ;;  %976 = vmax.xlane.f32.xlu0 %v975_v50  ;;  %v2860_v51 = vpop.f32.mrb[21].mxu0 }
 0x2e3   :  { %v822_v35 = vpop.f32.mrb[22].mxu0  ;;  %v978_v53 = vsel %vm947_vm3, %v3689_v48, -inf }
 0x2e4   :  { %v3695_v54 = vsel %vm3623_vm4, %v822_v35, -inf  ;;  %979 = vmax.xlane.f32.xlu1 %v978_v53  ;;  %v2861_v55 = vpop.f32.mrb[23].mxu0 }
 0x2e5   :  { %v866_v38 = vpop.f32.mrb[12].mxu1  ;;  %v981_v56 = vsel %vm947_vm3, %v3695_v54, -inf }
 0x2e6   :  { %v3703_v57 = vsel %vm3619_vm2, %v866_v38, -inf  ;;  %v2866_v58 = vpop.f32.mrb[13].mxu1  ;;  %982 = vmax.xlane.f32.xlu0 %v981_v56 }
 0x2e7   :  { %v869_v59 = vpop.f32.mrb[14].mxu1  ;;  %v984_v5 = vsel %vm947_vm3, %v3703_v57, -inf }
 0x2e8   :  { %v3709_v0 = vsel %vm3623_vm4, %v869_v59, -inf  ;;  %v2867_v3 = vpop.f32.mrb[15].mxu1  ;;  %985 = vmax.xlane.f32.xlu1 %v984_v5 }
 0x2e9   :  { %v913_v63 = vpop.f32.mrb[24].mxu0  ;;  %v987_v8 = vsel %vm947_vm3, %v3709_v0, -inf }
 0x2ea   :  { %v3715_v9 = vsel %vm3619_vm2, %v913_v63, -inf  ;;  %988 = vmax.xlane.f32.xlu0 %v987_v8  ;;  %v2872_v11 = vpop.f32.mrb[25].mxu0  ;;  %v3024_v8 = vunpack.i.h.bf16 %v3697_v52 }
 0x2eb   :  { %v916_v13 = vpop.f32.mrb[26].mxu0  ;;  %v990_v15 = vsel %vm947_vm3, %v3715_v9, -inf  ;;  %v3023_v11 = vunpack.i.l.bf16 %v3697_v52 }
 0x2ec   :  { %v3723_v16 = vsel %vm3623_vm4, %v916_v13, -inf  ;;  %991 = vmax.xlane.f32.xlu1 %v990_v15  ;;  %v2873_v17 = vpop.f32.mrb[27].mxu0 }
 0x2ed   :  { %v993_v19 = vsel %vm947_vm3, %v3723_v16, -inf }
 0x2ee   :  { %v950_v6 = vpop.xlane.xlu0 %949  ;;  %994 = vmax.xlane.f32.xlu0 %v993_v19 }
 0x2ef   :  { %v996_v20 = vsub.f32 %v3629_v62, %v950_v6 }
 0x2f0   :  { %v953_v21 = vpop.xlane.xlu1 %952 }
 0x2f1   :  { %v1012_v23 = vmul.f32 1.442695, %v996_v20  ;;  %v997_v24 = vsub.f32 %v3635_v10, %v953_v21  ;;  %v3029_v21 = vunpack.i.h.bf16 %v3717_v12 }
 0x2f3   :  { %v1014_v25 = vmul.f32 1.442695, %v997_v24  ;;  %3190 = vpow2.f32 %v1012_v23 }
 0x2f5   :  { %3192 = vpow2.f32 %v1014_v25 }
 0x2f6   :  { %v956_v27 = vpop.xlane.xlu0 %955 }
 0x2f7   :  { %v998_v60 = vsub.f32 %v3641_v14, %v956_v27  ;;  %v3028_v27 = vunpack.i.l.bf16 %v3717_v12 }
 0x2f9   :  { %v1016_v28 = vmul.f32 1.442695, %v998_v60  ;;  %v540_v12 = vpack.c.bf16 %v3029_v21, %v3028_v27 }
 0x2fa   :  { %v959_v29 = vpop.xlane.xlu0 %958 }
 0x2fb   :  { %v999_v37 = vsub.f32 %v3647_v18, %v959_v29  ;;  %3194 = vpow2.f32 %v1016_v28  ;;  %v3018_v18 = vunpack.i.l.bf16 %v3017_v7 }
 0x2fd   :  { %v1018_v39 = vmul.f32 1.442695, %v999_v37  ;;  %3036 = vrot.lane.b32.xlu1 %v3560_v2, %s3313_s10  ;;  %v3733_v62 = vpop.eup %3190  ;;  %v3019_v2 = vunpack.i.h.bf16 %v3017_v7 }
 0x2ff   :  { %v3735_v10 = vpop.eup %3192  ;;  %3196 = vpow2.f32 %v1018_v39  ;;  %v538_v44 = vpack.c.bf16 %v3019_v2, %v3018_v18 }
 0x300   :  { %v1092_v14 = vpack.c.bf16 %v3735_v10, %v3733_v62 }
 0x302   :  { %2877 = vmatmul.mubr.msk.bf16.vlgmr.msra.gmra.mrb[16].mxu1 %vm947_vm3, %v1092_v14 }
 0x303   :  { %2887 = vmatpush3.bf16.msra.mxu1 %v537_v40  ;;  %2888 = vmatprep.mubr.msk.bf16.mxu1 %vm3310_vm0, %v3309_v36 }
 0x304   :  { %3031 = vrot.lane.b32.xlu0 %v3566_v4, %s3313_s10  ;;  %2898 = vmatprep.subr.bf16.mxu1 %v3309_v36 }
 0x305   :  { %v3745_v41 = vpop.eup %3194 }
 0x309   :  { %v3747_v43 = vpop.eup %3196 }
 0x30a   :  { %v1093_v45 = vpack.c.bf16 %v3747_v43, %v3745_v41 }
 0x30c   :  { %2883 = vmatmul.mubr.msk.bf16.vlgmr.msra.gmra.mrb[28].mxu0 %vm947_vm3, %v1093_v45 }
 0x30d   :  { %2893 = vmatpush3.bf16.msra.mxu0 %v538_v44  ;;  %2894 = vmatprep.mubr.msk.bf16.mxu0 %vm3310_vm0, %v3309_v36 }
 0x30e   :  { %2904 = vmatprep.subr.bf16.mxu0 %v3309_v36 }
 0x365   :  { %v962_v4 = vpop.xlane.xlu1 %961 }
 0x366   :  { %v1000_v47 = vsub.f32 %v3653_v22, %v962_v4 }
 0x367   :  { %v965_v46 = vpop.xlane.xlu0 %964 }
 0x368   :  { %v1020_v49 = vmul.f32 1.442695, %v1000_v47  ;;  %v1001_v50 = vsub.f32 %v3659_v26, %v965_v46 }
 0x369   :  { %v968_v51 = vpop.xlane.xlu1 %967 }
 0x36a   :  { %3198 = vpow2.f32 %v1020_v49  ;;  %v1022_v35 = vmul.f32 1.442695, %v1001_v50  ;;  %v1002_v53 = vsub.f32 %v3665_v30, %v968_v51 }
 0x36b   :  { %v971_v55 = vpop.xlane.xlu0 %970 }
 0x36c   :  { %3200 = vpow2.f32 %v1022_v35  ;;  %v1024_v38 = vmul.f32 1.442695, %v1002_v53  ;;  %v1003_v56 = vsub.f32 %v3671_v31, %v971_v55 }
 0x36d   :  { %v974_v58 = vpop.xlane.xlu1 %973 }
 0x36e   :  { %3202 = vpow2.f32 %v1024_v38  ;;  %v1026_v59 = vmul.f32 1.442695, %v1003_v56  ;;  %v1004_v5 = vsub.f32 %v3677_v42, %v974_v58 }
 0x36f   :  { %v977_v22 = vpop.xlane.xlu0 %976 }
 0x370   :  { %3204 = vpow2.f32 %v1026_v59  ;;  %v1028_v3 = vmul.f32 1.442695, %v1004_v5  ;;  %v1005_v26 = vsub.f32 %v3683_v33, %v977_v22 }
 0x371   :  { %v980_v7 = vpop.xlane.xlu1 %979 }
 0x372   :  { %3206 = vpow2.f32 %v1028_v3  ;;  %v1030_v63 = vmul.f32 1.442695, %v1005_v26  ;;  %v1006_v30 = vsub.f32 %v3689_v48, %v980_v7  ;;  %v539_v48 = vpack.c.bf16 %v3024_v8, %v3023_v11 }
 0x373   :  { %v983_v31 = vpop.xlane.xlu0 %982 }
 0x374   :  { %v3199_v13 = vpop.eup %3198  ;;  %3208 = vpow2.f32 %v1030_v63  ;;  %v1032_v15 = vmul.f32 1.442695, %v1006_v30  ;;  %v1007_v42 = vsub.f32 %v3695_v54, %v983_v31  ;;  %v1044_v31 = vsel %vm947_vm3, %v3733_v62, 0.0 }
 0x375   :  { %v986_v17 = vpop.xlane.xlu1 %985  ;;  %v1056_v19 = vsel %vm947_vm3, %v3199_v13, 0.0 }
 0x376   :  { %v3201_v6 = vpop.eup %3200  ;;  %3210 = vpow2.f32 %v1032_v15  ;;  %v1034_v33 = vmul.f32 1.442695, %v1007_v42  ;;  %v1008_v20 = vsub.f32 %v3703_v57, %v986_v17  ;;  %1057 = vadd.xlane.f32.xlu0 %v1056_v19  ;;  %v1047_v15 = vsel %vm947_vm3, %v3735_v10, 0.0  ;;  %v3102_v10 = vld [vmem:[%s4171_s2] sm:$0xff]  }
 0x377   :  { %v989_v23 = vpop.xlane.xlu0 %988  ;;  %v1059_v52 = vsel %vm947_vm3, %v3201_v6, 0.0  ;;  %v1094_v24 = vpack.c.bf16 %v3201_v6, %v3199_v13  ;;  %v1053_v42 = vsel %vm947_vm3, %v3747_v43, 0.0  ;;  %v3103_v43 = vld [vmem:[%s4171_s2 + $0x8] sm:$0xff]  }
 0x378   :  { %v3203_v25 = vpop.eup %3202  ;;  %3212 = vpow2.f32 %v1034_v33  ;;  %v1036_v54 = vmul.f32 1.442695, %v1008_v20  ;;  %v1009_v60 = vsub.f32 %v3709_v0, %v989_v23  ;;  %1060 = vadd.xlane.f32.xlu1 %v1059_v52 }
 0x379   :  { %2889 = vmatmul.mubr.msk.bf16.vlgmr.msra.gmra.mrb[20].mxu1 %vm947_vm3, %v1094_v24  ;;  %v992_v28 = vpop.xlane.xlu1 %991  ;;  %v1062_v57 = vsel %vm947_vm3, %v3203_v25, 0.0 }
 0x37a   :  { %v3205_v29 = vpop.eup %3204  ;;  %3214 = vpow2.f32 %v1036_v54  ;;  %v1038_v32 = vmul.f32 1.442695, %v1009_v60  ;;  %2899 = vmatpush3.bf16.msra.mxu1 %v539_v48  ;;  %v1010_v34 = vsub.f32 %v3715_v9, %v992_v28  ;;  %1063 = vadd.xlane.f32.xlu0 %v1062_v57  ;;  %v3104_v54 = vld [vmem:[%s4171_s2 + $0x10] sm:$0xff]   ;;  %v3105_v57 = vld [vmem:[%s4171_s2 + $0x18] sm:$0xff]  }
 0x37b   :  { %v995_v37 = vpop.xlane.xlu0 %994  ;;  %v1095_v39 = vpack.c.bf16 %v3205_v29, %v3203_v25  ;;  %2900 = vmatprep.mubr.msk.bf16.mxu1 %vm3310_vm0, %v3309_v36  ;;  %2910 = vmatprep.subr.bf16.mxu1 %v3309_v36  ;;  %v1065_v45 = vsel %vm947_vm3, %v3205_v29, 0.0 }
 0x37c   :  { %v3207_v0 = vpop.eup %3206  ;;  %3216 = vpow2.f32 %v1038_v32  ;;  %v1040_v40 = vmul.f32 1.442695, %v1010_v34  ;;  %v1011_v14 = vsub.f32 %v3723_v16, %v995_v37 }
 0x37d   :  { %2895 = vmatmul.mubr.msk.bf16.vlgmr.msra.gmra.mrb[32].mxu0 %vm947_vm3, %v1095_v39  ;;  %v3037_v2 = vpop.permute.xlu1 %3036  ;;  %v1068_v18 = vsel %vm947_vm3, %v3207_v0, 0.0 }
 0x37e   :  { %v3209_v9 = vpop.eup %3208  ;;  %3218 = vpow2.f32 %v1040_v40  ;;  %v1042_v44 = vmul.f32 1.442695, %v1011_v14  ;;  %2905 = vmatpush3.bf16.msra.mxu0 %v540_v12  ;;  %1069 = vadd.xlane.f32.xlu1 %v1068_v18  ;;  %v3039_v4 = vunpack.i.h.bf16 %v3037_v2  ;;  %v3038_v49 = vunpack.i.l.bf16 %v3037_v2  ;;  %v3106_v12 = vld [vmem:[%s4171_s2 + $0x20] sm:$0xff]  }
 0x37f   :  { %1066 = vadd.xlane.f32.xlu0 %v1065_v45  ;;  %v3032_v47 = vpop.permute.xlu0 %3031  ;;  %v1096_v46 = vpack.c.bf16 %v3209_v9, %v3207_v0  ;;  %2906 = vmatprep.mubr.msk.bf16.mxu0 %vm3310_vm0, %v3309_v36  ;;  %v1071_v38 = vsel %vm947_vm3, %v3209_v9, 0.0 }
 0x380   :  { %v3211_v16 = vpop.eup %3210  ;;  %3220 = vpow2.f32 %v1042_v44  ;;  %v3034_v50 = vunpack.i.h.bf16 %v3032_v47  ;;  %v3033_v51 = vunpack.i.l.bf16 %v3032_v47  ;;  %2916 = vmatprep.subr.bf16.mxu0 %v3309_v36  ;;  %v542_v59 = vpack.c.bf16 %v3039_v4, %v3038_v49 }
 0x381   :  { %2901 = vmatmul.mubr.msk.bf16.vlgmr.msra.gmra.mrb[24].mxu1 %vm947_vm3, %v1096_v46  ;;  %v1074_v35 = vsel %vm947_vm3, %v3211_v16, 0.0 }
 0x382   :  { %v3213_v53 = vpop.eup %3212  ;;  %v541_v55 = vpack.c.bf16 %v3034_v50, %v3033_v51  ;;  %1075 = vadd.xlane.f32.xlu1 %v1074_v35  ;;  %2912 = vmatprep.mubr.msk.bf16.mxu1 %vm3310_vm0, %v3309_v36 }
 0x383   :  { %1072 = vadd.xlane.f32.xlu0 %v1071_v38  ;;  %v1097_v56 = vpack.c.bf16 %v3213_v53, %v3211_v16  ;;  %v1077_v3 = vsel %vm947_vm3, %v3213_v53, 0.0  ;;  %v3107_v16 = vld [vmem:[%s4171_s2 + $0x28] sm:$0xff]  }
 0x384   :  { %v3215_v58 = vpop.eup %3214  ;;  %2911 = vmatpush3.bf16.msra.mxu1 %v541_v55 }
 0x385   :  { %2907 = vmatmul.mubr.msk.bf16.vlgmr.msra.gmra.mrb[36].mxu0 %vm947_vm3, %v1097_v56  ;;  %v1080_v5 = vsel %vm947_vm3, %v3215_v58, 0.0  ;;  %2922 = vmatprep.subr.bf16.mxu1 %v3102_v10 }
 0x386   :  { %v3217_v22 = vpop.eup %3216  ;;  %2917 = vmatpush3.bf16.msra.mxu0 %v542_v59  ;;  %1081 = vadd.xlane.f32.xlu1 %v1080_v5 }
 0x387   :  { %1078 = vadd.xlane.f32.xlu0 %v1077_v3  ;;  %v1098_v26 = vpack.c.bf16 %v3217_v22, %v3215_v58  ;;  %2918 = vmatprep.mubr.msk.bf16.mxu0 %vm3310_vm0, %v3309_v36  ;;  %v1083_v8 = vsel %vm947_vm3, %v3217_v22, 0.0  ;;  %v1050_v36 = vsel %vm947_vm3, %v3745_v41, 0.0  ;;  %v3108_v22 = vld [vmem:[%s4171_s2 + $0x30] sm:$0xff]  }
 0x388   :  { %v3219_v7 = vpop.eup %3218 }
 0x389   :  { %2913 = vmatmul.mubr.msk.bf16.vlgmr.msra.gmra.mrb[28].mxu1 %vm947_vm3, %v1098_v26  ;;  %v1086_v63 = vsel %vm947_vm3, %v3219_v7, 0.0 }
 0x38a   :  { %v3221_v30 = vpop.eup %3220  ;;  %1087 = vadd.xlane.f32.xlu1 %v1086_v63  ;;  %2923 = vmatpush3.bf16.msra.mxu1 %v3102_v10 }
 0x38b   :  { %1084 = vadd.xlane.f32.xlu0 %v1083_v8  ;;  %v1099_v11 = vpack.c.bf16 %v3221_v30, %v3219_v7  ;;  %v1089_v13 = vsel %vm947_vm3, %v3221_v30, 0.0  ;;  %2924 = vmatprep.subr.bf16.mxu1 %v3103_v43 }
 0x38d   :  { %2919 = vmatmul.mubr.msk.bf16.vlgmr.msra.gmra.mrb[40].mxu0 %vm947_vm3, %v1099_v11 }
 0x38e   :  { %1045 = vadd.xlane.f32.xlu1 %v1044_v31  ;;  %1977 = vmatprep.mubr.bf16.mxu0 %v3306_v1 }
 0x38f   :  { %1090 = vadd.xlane.f32.xlu0 %v1089_v13  ;;  %2925 = vmatpush3.bf16.msra.mxu1 %v3103_v43 }
 0x390   :  { %2926 = vmatprep.subr.bf16.mxu1 %v3104_v54 }
 0x392   :  { %1051 = vadd.xlane.f32.xlu1 %v1050_v36  ;;  %v3109_v36 = vld [vmem:[%s4171_s2 + $0x38] sm:$0xff]  }
 0x393   :  { %1048 = vadd.xlane.f32.xlu0 %v1047_v15  ;;  %2927 = vmatpush3.bf16.msra.mxu1 %v3104_v54 }
 0x394   :  { %2928 = vmatprep.subr.bf16.mxu1 %v3105_v57 }
 0x397   :  { %1054 = vadd.xlane.f32.xlu0 %v1053_v42  ;;  %2929 = vmatpush3.bf16.msra.mxu1 %v3105_v57 }
 0x398   :  { %2930 = vmatprep.subr.bf16.mxu1 %v3106_v12 }
 0x39b   :  { %2931 = vmatpush3.bf16.msra.mxu1 %v3106_v12 }
 0x39c   :  { %2932 = vmatprep.subr.bf16.mxu1 %v3107_v16 }
 0x39f   :  { %2933 = vmatpush3.bf16.msra.mxu1 %v3107_v16 }
 0x3a0   :  { %2934 = vmatprep.subr.bf16.mxu1 %v3108_v22 }
 0x3a3   :  { %2935 = vmatpush3.bf16.msra.mxu1 %v3108_v22 }
 0x3a4   :  { %2936 = vmatprep.subr.bf16.mxu1 %v3109_v36 }
 0x3a7   :  { %2937 = vmatpush3.bf16.msra.mxu1 %v3109_v36 }
 0x3d5   :  { %v3808_v17 = vpop.f32.mrb[16].mxu1 }
 0x3d6   :  { %v2878_v62 = vpop.f32.mrb[17].mxu1 }
 0x3d7   :  { %v3810_v19 = vpop.f32.mrb[18].mxu1 }
 0x3d8   :  { %v2879_v6 = vpop.f32.mrb[19].mxu1 }
 0x3df   :  { %v3812_v33 = vpop.f32.mrb[28].mxu0 }
 0x3e0   :  { %v2884_v20 = vpop.f32.mrb[29].mxu0 }
 0x3e1   :  { %v3814_v48 = vpop.f32.mrb[30].mxu0 }
 0x3e2   :  { %v2885_v41 = vpop.f32.mrb[31].mxu0 }
 0x403   :  { %v1058_v21 = vpop.xlane.xlu0 %1057 }
 0x404   :  { %3222 = vrcp.f32 %v1058_v21 }
 0x405   :  { %v1061_v24 = vpop.xlane.xlu1 %1060 }
 0x406   :  { %3224 = vrcp.f32 %v1061_v24 }
 0x407   :  { %v1064_v23 = vpop.xlane.xlu0 %1063 }
 0x408   :  { %3226 = vrcp.f32 %v1064_v23 }
 0x40b   :  { %v1070_v25 = vpop.xlane.xlu1 %1069 }
 0x40c   :  { %v1067_v52 = vpop.xlane.xlu0 %1066 }
 0x40d   :  { %3228 = vrcp.f32 %v1067_v52 }
 0x40e   :  { %3230 = vrcp.f32 %v1070_v25  ;;  %v3223_v32 = vpop.eup %3222 }
 0x40f   :  { %v1076_v60 = vpop.xlane.xlu1 %1075 }
 0x410   :  { %v1073_v27 = vpop.xlane.xlu0 %1072  ;;  %v3225_v37 = vpop.eup %3224 }
 0x411   :  { %3232 = vrcp.f32 %v1073_v27 }
 0x412   :  { %3234 = vrcp.f32 %v1076_v60  ;;  %v3227_v44 = vpop.eup %3226 }
 0x413   :  { %v1082_v39 = vpop.xlane.xlu1 %1081 }
 0x414   :  { %v1079_v28 = vpop.xlane.xlu0 %1078 }
 0x415   :  { %3236 = vrcp.f32 %v1079_v28 }
 0x416   :  { %3238 = vrcp.f32 %v1082_v39 }
 0x417   :  { %v3229_v47 = vpop.eup %3228  ;;  %v1088_v35 = vpop.xlane.xlu1 %1087 }
 0x418   :  { %v1085_v40 = vpop.xlane.xlu0 %1084  ;;  %v3231_v55 = vpop.eup %3230 }
 0x419   :  { %3240 = vrcp.f32 %v1085_v40 }
 0x41a   :  { %3242 = vrcp.f32 %v1088_v35 }
 0x41b   :  { %v3233_v59 = vpop.eup %3232  ;;  %v1046_v39 = vpop.xlane.xlu1 %1045 }
 0x41c   :  { %v1091_v38 = vpop.xlane.xlu0 %1090  ;;  %v3235_v30 = vpop.eup %3234 }
 0x41d   :  { %3244 = vrcp.f32 %v1091_v38 }
 0x41e   :  { %3246 = vrcp.f32 %v1046_v39  ;;  %v3112_v39 = vld [vmem:[%s4173_s4 + $0x4] ss:$16 sps:$4 sm:$0xff]  }
 0x41f   :  { %v3237_v31 = vpop.eup %3236  ;;  %v1052_v12 = vpop.xlane.xlu1 %1051  ;;  %1945 = vmatprep.subr.bf16.mxu0 %v3112_v39 }
 0x420   :  { %v3239_v20 = vpop.eup %3238 }
 0x423   :  { %v3241_v43 = vpop.eup %3240 }
 0x424   :  { %v3243_v27 = vpop.eup %3242 }
 0x427   :  { %v3245_v28 = vpop.eup %3244 }
 0x44c   :  { %v1225_v29 = vpop.f32.mrb[20].mxu1 }
 0x44d   :  { %v2890_v34 = vpop.f32.mrb[21].mxu1  ;;  %v1472_v14 = vmul.f32 %v3223_v32, %v1225_v29 }
 0x44e   :  { %v1228_v0 = vpop.f32.mrb[22].mxu1 }
 0x44f   :  { %v1473_v2 = vmul.f32 %v3225_v37, %v1228_v0  ;;  %v2891_v18 = vpop.f32.mrb[23].mxu1  ;;  %v1049_v0 = vpop.xlane.xlu0 %1048 }
 0x450   :  { %v1269_v9 = vpop.f32.mrb[32].mxu0  ;;  %3248 = vrcp.f32 %v1049_v0  ;;  %v3247_v18 = vpop.eup %3246  ;;  %v3113_v0 = vld [vmem:[%s4173_s4 + $0x8] ss:$16 sps:$4 sm:$0xff]  }
 0x451   :  { %v3040_v45 = vpack.i.bf16 %v1473_v2, %v1472_v14  ;;  %v2896_v4 = vpop.f32.mrb[33].mxu0  ;;  %v1474_v49 = vmul.f32 %v3227_v44, %v1269_v9  ;;  %3250 = vrcp.f32 %v1052_v12  ;;  %v3115_v12 = vld [vmem:[%s4173_s4 + $0xc] ss:$16 sps:$4 sm:$0xff]  }
 0x452   :  { %v1272_v46 = vpop.f32.mrb[34].mxu0  ;;  %1998 = vmatprep.subr.bf16.mxu1 %v3115_v12 }
 0x453   :  { %v1475_v50 = vmul.f32 %v3229_v47, %v1272_v46  ;;  %3041 = vrot.lane.b32.xlu1 %v3040_v45, %s3313_s10  ;;  %v2897_v51 = vpop.f32.mrb[35].mxu0  ;;  %v1055_v40 = vpop.xlane.xlu0 %1054  ;;  %v1468_v47 = vmul.f32 %v3247_v18, %v3808_v17  ;;  %v3121_v18 = vld [vmem:[%s4173_s4 + $0x2c] ss:$16 sps:$4 sm:$0xff]  }
 0x454   :  { %v1313_v53 = vpop.f32.mrb[24].mxu1  ;;  %3252 = vrcp.f32 %v1055_v40  ;;  %v3116_v40 = vld [vmem:[%s4173_s4 + $0x20] ss:$16 sps:$4 sm:$0xff]  }
 0x455   :  { %v3045_v56 = vpack.i.bf16 %v1475_v50, %v1474_v49  ;;  %v2902_v58 = vpop.f32.mrb[25].mxu1  ;;  %v1476_v3 = vmul.f32 %v3231_v55, %v1313_v53 }
 0x456   :  { %v1316_v5 = vpop.f32.mrb[26].mxu1 }
 0x457   :  { %v1477_v26 = vmul.f32 %v3233_v59, %v1316_v5  ;;  %v2903_v7 = vpop.f32.mrb[27].mxu1  ;;  %3046 = vrot.lane.b32.xlu0 %v3045_v56, %s3313_s10 }
 0x458   :  { %v1357_v63 = vpop.f32.mrb[36].mxu0 }
 0x459   :  { %v3050_v8 = vpack.i.bf16 %v1477_v26, %v1476_v3  ;;  %v2908_v11 = vpop.f32.mrb[37].mxu0  ;;  %v1478_v15 = vmul.f32 %v3235_v30, %v1357_v63 }
 0x45a   :  { %v1360_v13 = vpop.f32.mrb[38].mxu0  ;;  %v3249_v9 = vpop.eup %3248 }
 0x45b   :  { %v1479_v42 = vmul.f32 %v3237_v31, %v1360_v13  ;;  %3051 = vrot.lane.b32.xlu1 %v3050_v8, %s3312_s9  ;;  %v2909_v62 = vpop.f32.mrb[39].mxu0  ;;  %v1469_v46 = vmul.f32 %v3249_v9, %v3810_v19  ;;  %v3251_v50 = vpop.eup %3250  ;;  %v3122_v9 = vld [vmem:[%s4173_s4 + $0x40] ss:$16 sps:$4 sm:$0xff]  }
 0x45c   :  { %v1401_v6 = vpop.f32.mrb[28].mxu1  ;;  %v1470_v26 = vmul.f32 %v3251_v50, %v3812_v33 }
 0x45d   :  { %v3055_v41 = vpack.i.bf16 %v1479_v42, %v1478_v15  ;;  %v2914_v10 = vpop.f32.mrb[29].mxu1  ;;  %v1480_v23 = vmul.f32 %v3239_v20, %v1401_v6  ;;  %v2624_v20 = vld [vmem:[%s4172_s3] ss:$0 sm:$0xff] }
 0x45e   :  { %v1404_v21 = vpop.f32.mrb[30].mxu1  ;;  %v3253_v35 = vpop.eup %3252 }
 0x45f   :  { %v1481_v52 = vmul.f32 %v3241_v43, %v1404_v21  ;;  %v2915_v24 = vpop.f32.mrb[31].mxu1  ;;  %3056 = vrot.lane.b32.xlu1 %v3055_v41, %s3312_s9  ;;  %v1471_v7 = vmul.f32 %v3253_v35, %v3814_v48 }
 0x460   :  { %v1445_v25 = vpop.f32.mrb[40].mxu0 }
 0x461   :  { %v3060_v54 = vpack.i.bf16 %v1481_v52, %v1480_v23  ;;  %v2920_v60 = vpop.f32.mrb[41].mxu0  ;;  %v1482_v29 = vmul.f32 %v3243_v27, %v1445_v25  ;;  %v3302_v25 = vld [vmem:[%s4167_s0] sm:$0xff] }
 0x462   :  { %v1448_v57 = vpop.f32.mrb[42].mxu0 }
 0x463   :  { %v1483_v32 = vmul.f32 %v3245_v28, %v1448_v57  ;;  %3061 = vrot.lane.b32.xlu0 %v3060_v54, %s3311_s8  ;;  %v2921_v34 = vpop.f32.mrb[43].mxu0  ;;  %v3303_v54 = vld [vmem:[%s4167_s0 + $0x8] sm:$0xff]  ;;  %v3304_v57 = vld [vmem:[%s4167_s0 + $0x10] sm:$0xff] }
 0x465   :  { %v3065_v37 = vpack.i.bf16 %v1483_v32, %v1482_v29  ;;  %v3305_v32 = vld [vmem:[%s4167_s0 + $0x18] sm:$0xff] }
 0x467   :  { %3066 = vrot.lane.b32.xlu1 %v3065_v37, %s3311_s8  ;;  %v3110_v37 = vld [vmem:[%s4173_s4] ss:$16 sps:$4 sm:$0xff]  }
 0x468   :  { %1946 = vmatpush1.bf16.msra.mxu0 %v3110_v37 }
 0x4c5   :  { %v3042_v14 = vpop.permute.xlu1 %3041 }
 0x4c6   :  { %v3044_v44 = vunpack.i.h.bf16 %v3042_v14  ;;  %v3043_v45 = vunpack.i.l.bf16 %v3042_v14  ;;  %v3118_v14 = vld [vmem:[%s4173_s4 + $0x24] ss:$16 sps:$4 sm:$0xff]  }
 0x4c7   :  { %1947 = vmatprep.subr.bf16.mxu0 %v3118_v14  ;;  %v3160_v14 = vld [vmem:[%s4174_s6] sm:$0xff]  }
 0x4c8   :  { %v1532_v53 = vsel %vm543_vm1, %v1468_v47, %v3043_v45  ;;  %v1533_v55 = vsel %vm543_vm1, %v1469_v46, %v3044_v44  ;;  %v3124_v44 = vld [vmem:[%s4173_s4 + $0x44] ss:$16 sps:$4 sm:$0xff]   ;;  %v3125_v45 = vld [vmem:[%s4173_s4 + $0x48] ss:$16 sps:$4 sm:$0xff]   ;;  %1948 = vmatpush1.bf16.msra.mxu0 %v3116_v40 }
 0x4c9   :  { %v3047_v4 = vpop.permute.xlu0 %3046  ;;  %1949 = vmatprep.subr.bf16.mxu0 %v3124_v44 }
 0x4ca   :  { %v3049_v56 = vunpack.i.h.bf16 %v3047_v4  ;;  %v3048_v58 = vunpack.i.l.bf16 %v3047_v4  ;;  %v3127_v4 = vld [vmem:[%s4173_s4 + $0x4c] ss:$16 sps:$4 sm:$0xff]  }
 0x4cc   :  { %v1535_v31 = vsel %vm543_vm1, %v1471_v7, %v3049_v56  ;;  %v1534_v13 = vsel %vm543_vm1, %v1470_v26, %v3048_v58  ;;  %1950 = vmatpush1.bf16.msra.mxu0 %v3122_v9  ;;  %v3128_v26 = vld [vmem:[%s4173_s4 + $0x60] ss:$16 sps:$4 sm:$0xff]   ;;  %v3131_v7 = vld [vmem:[%s4173_s4 + $0x68] ss:$16 sps:$4 sm:$0xff]  }
 0x4cd   :  { %v3052_v2 = vpop.permute.xlu1 %3051  ;;  %v3163_v9 = vld [vmem:[%s4174_s6 + $0xc8] sm:$0xff]  }
 0x4ce   :  { %v3054_v16 = vunpack.i.h.bf16 %v3052_v2  ;;  %v3053_v49 = vunpack.i.l.bf16 %v3052_v2  ;;  %v3119_v2 = vld [vmem:[%s4173_s4 + $0x28] ss:$16 sps:$4 sm:$0xff]  }
 0x4d0   :  { %v1537_v17 = vsel %vm1536_vm5, %v1532_v53, %v3053_v49  ;;  %v1538_v19 = vsel %vm1536_vm5, %v1533_v55, %v3054_v16 }
 0x4d1   :  { %v3057_v51 = vpop.permute.xlu1 %3056 }
 0x4d2   :  { %v3059_v22 = vunpack.i.h.bf16 %v3057_v51  ;;  %v3058_v3 = vunpack.i.l.bf16 %v3057_v51 }
 0x4d4   :  { %v1540_v42 = vsel %vm1536_vm5, %v1535_v31, %v3059_v22  ;;  %v1539_v62 = vsel %vm1536_vm5, %v1534_v13, %v3058_v3  ;;  %v3130_v22 = vld [vmem:[%s4173_s4 + $0x64] ss:$16 sps:$4 sm:$0xff]   ;;  %v3133_v3 = vld [vmem:[%s4173_s4 + $0x6c] ss:$16 sps:$4 sm:$0xff]  }
 0x4d5   :  { %v3062_v38 = vpop.permute.xlu0 %3061  ;;  %1951 = vmatprep.subr.bf16.mxu0 %v3130_v22  ;;  %v3142_v31 = vld [vmem:[%s4173_s4 + $0xa4] ss:$16 sps:$4 sm:$0xff]   ;;  %v3145_v13 = vld [vmem:[%s4173_s4 + $0xac] ss:$16 sps:$4 sm:$0xff]  }
 0x4d6   :  { %v3064_v59 = vunpack.i.h.bf16 %v3062_v38  ;;  %v3063_v5 = vunpack.i.l.bf16 %v3062_v38  ;;  %1952 = vmatpush1.bf16.msra.mxu0 %v3128_v26  ;;  %v3179_v22 = vld [vmem:[%s4174_s6 + $0xe8] sm:$0xff]  }
 0x4d7   :  { %v3181_v26 = vld [vmem:[%s4174_s6 + $0xa8] sm:$0xff]  }
 0x4d8   :  { %v1542_v63 = vsel %vm1541_vm6, %v1537_v17, %v3063_v5  ;;  %v1543_v30 = vsel %vm1541_vm6, %v1538_v19, %v3064_v59 }
 0x4d9   :  { %v3067_v8 = vpop.permute.xlu1 %3066  ;;  %v1546_v11 = vpack.c.bf16 %v1543_v30, %v1542_v63  ;;  %v3136_v63 = vld [vmem:[%s4173_s4 + $0x84] ss:$16 sps:$4 sm:$0xff]   ;;  %v3139_v30 = vld [vmem:[%s4173_s4 + $0x8c] ss:$16 sps:$4 sm:$0xff]  }
 0x4da   :  { %v3069_v36 = vunpack.i.h.bf16 %v3067_v8  ;;  %v3068_v15 = vunpack.i.l.bf16 %v3067_v8  ;;  %v3134_v8 = vld [vmem:[%s4173_s4 + $0x80] ss:$16 sps:$4 sm:$0xff]   ;;  %1953 = vmatprep.subr.bf16.mxu0 %v3136_v63 }
 0x4db   :  { %2938 = vmatprep.mubr.bf16.mxu1 %v1546_v11  ;;  %v3137_v11 = vld [vmem:[%s4173_s4 + $0x88] ss:$16 sps:$4 sm:$0xff]   ;;  %1954 = vmatpush1.bf16.msra.mxu0 %v3134_v8  ;;  %v3183_v63 = vld [vmem:[%s4174_s6 + $0xf0] sm:$0xff]  }
 0x4dc   :  { %v1545_v33 = vsel %vm1541_vm6, %v1540_v42, %v3069_v36  ;;  %v1544_v48 = vsel %vm1541_vm6, %v1539_v62, %v3068_v15  ;;  %v3140_v36 = vld [vmem:[%s4173_s4 + $0xa0] ss:$16 sps:$4 sm:$0xff]   ;;  %v3143_v15 = vld [vmem:[%s4173_s4 + $0xa8] ss:$16 sps:$4 sm:$0xff]   ;;  %1955 = vmatprep.subr.bf16.mxu0 %v3142_v31  ;;  %v3148_v62 = vld [vmem:[%s4173_s4 + $0xc4] ss:$16 sps:$4 sm:$0xff]  }
 0x4dd   :  { %v1547_v6 = vpack.c.bf16 %v1545_v33, %v1544_v48  ;;  %v3146_v42 = vld [vmem:[%s4173_s4 + $0xc0] ss:$16 sps:$4 sm:$0xff]   ;;  %v3149_v33 = vld [vmem:[%s4173_s4 + $0xc8] ss:$16 sps:$4 sm:$0xff]   ;;  %v3151_v48 = vld [vmem:[%s4173_s4 + $0xcc] ss:$16 sps:$4 sm:$0xff]  }
 0x4de   :  { %v3185_v8 = vld [vmem:[%s4174_s6 + $0xb0] sm:$0xff]   ;;  %v3187_v31 = vld [vmem:[%s4174_s6 + $0xf8] sm:$0xff]  }
 0x4df   :  { %2939 = vmatmul.mubr.bf16.vlgmr.msra.gmra.mrb[32].mxu1 %v1547_v6  ;;  %1956 = vmatpush1.bf16.msra.mxu0 %v3140_v36  ;;  %v3154_v6 = vld [vmem:[%s4173_s4 + $0xe4] ss:$16 sps:$4 sm:$0xff]   ;;  %v3189_v36 = vld [vmem:[%s4174_s6 + $0xb8] sm:$0xff]  }
 0x4e0   :  { %2030 = vmatprep.mubr.bf16.mxu1 %v3306_v1  ;;  %1999 = vmatpush1.bf16.msra.mxu1 %v3113_v0 }
 0x4e1   :  { %2000 = vmatprep.subr.bf16.mxu1 %v3121_v18  ;;  %1957 = vmatprep.subr.bf16.mxu0 %v3148_v62  ;;  %v3162_v18 = vld [vmem:[%s4174_s6 + $0x48] sm:$0xff]   ;;  %v1763_v62 = vld [vmem:[%s4175_s5] sm:$0xf] }
 0x4e3   :  { %1958 = vmatpush1.bf16.msra.mxu0 %v3146_v42  ;;  %v1775_v42 = vsub.s32 2, %v3615_v61 }
 0x4e4   :  { %2001 = vmatpush1.bf16.msra.mxu1 %v3119_v2  ;;  %1959 = vmatprep.subr.bf16.mxu0 %v3154_v6  ;;  %v3161_v2 = vld [vmem:[%s4174_s6 + $0x80] sm:$0xff]  }
 0x4e5   :  { %2002 = vmatprep.subr.bf16.mxu1 %v3127_v4 }
 0x4e8   :  { %2003 = vmatpush1.bf16.msra.mxu1 %v3125_v45 }
 0x4e9   :  { %2004 = vmatprep.subr.bf16.mxu1 %v3133_v3  ;;  %v3180_v3 = vld [vmem:[%s4174_s6 + $0x28] sm:$0xff]  }
 0x4ec   :  { %2005 = vmatpush1.bf16.msra.mxu1 %v3131_v7  ;;  %v3182_v7 = vld [vmem:[%s4174_s6 + $0x70] sm:$0xff]  }
 0x4ed   :  { %2006 = vmatprep.subr.bf16.mxu1 %v3139_v30  ;;  %v3184_v30 = vld [vmem:[%s4174_s6 + $0x30] sm:$0xff]  }
 0x4f0   :  { %2007 = vmatpush1.bf16.msra.mxu1 %v3137_v11  ;;  %v3186_v11 = vld [vmem:[%s4174_s6 + $0x78] sm:$0xff]  }
 0x4f1   :  { %2008 = vmatprep.subr.bf16.mxu1 %v3145_v13  ;;  %v3188_v13 = vld [vmem:[%s4174_s6 + $0x38] sm:$0xff]  }
 0x4f4   :  { %2009 = vmatpush1.bf16.msra.mxu1 %v3143_v15  ;;  %v1767_v15 = vsub.s32 0, %v3615_v61 }
 0x4f5   :  { %2010 = vmatprep.subr.bf16.mxu1 %v3151_v48  ;;  %v1779_v48 = vsub.s32 3, %v3615_v61 }
 0x4f6   :  { %v1768_v6 = vrot.slane %v1763_v62, %v1767_v15 }
 0x4f8   :  { %2011 = vmatpush1.bf16.msra.mxu1 %v3149_v33  ;;  %v1771_v33 = vsub.s32 1, %v3615_v61 }
 0x5b2   :  { %v2940_v41 = vpop.f32.mrb[32].mxu1 }
 0x5b3   :  { %v1653_v10 = vpop.f32.mrb[33].mxu1  ;;  %v1662_v52 = vadd.f32 %v2940_v41, %v2624_v20  ;;  %v3152_v41 = vld [vmem:[%s4173_s4 + $0xe0] ss:$16 sps:$4 sm:$0xff]  }
 0x5b4   :  { %v1654_v43 = vadd.f32 %v2624_v20, %v1653_v10  ;;  %v2941_v21 = vpop.f32.mrb[34].mxu1  ;;  %v3155_v10 = vld [vmem:[%s4173_s4 + $0xe8] ss:$16 sps:$4 sm:$0xff]   ;;  %1960 = vmatpush1.bf16.msra.mxu0 %v3152_v41  ;;  %v1772_v41 = vrot.slane %v1763_v62, %v1771_v33 }
 0x5b5   :  { %v1656_v23 = vpop.f32.mrb[35].mxu1  ;;  %v1665_v28 = vadd.f32 %v2941_v21, %v2624_v20  ;;  %v1670_v29 = vadd.f32 %v3304_v57, %v1662_v52  ;;  %v3159_v21 = vld [vmem:[%s4174_s6 + $0xc0] sm:$0xff]  }
 0x5b6   :  { %v1657_v24 = vadd.f32 %v2624_v20, %v1656_v23  ;;  %v1668_v27 = vadd.f32 %v3302_v25, %v1654_v43  ;;  %v3157_v20 = vld [vmem:[%s4173_s4 + $0xec] ss:$16 sps:$4 sm:$0xff]   ;;  %v3158_v43 = vld [vmem:[%s4174_s6 + $0x40] sm:$0xff]  }
 0x5b7   :  { %v1671_v34 = vadd.f32 %v3305_v32, %v1665_v28  ;;  %2012 = vmatprep.subr.bf16.mxu1 %v3157_v20  ;;  %2750 = vmatprep.subr.bf16.mxu0 %v3158_v43  ;;  %v1776_v20 = vrot.slane %v1763_v62, %v1775_v42 }
 0x5b8   :  { %1672 = vadd.xlane.f32.xlu0 %v1668_v27  ;;  %v1669_v60 = vadd.f32 %v3303_v54, %v1657_v24  ;;  %2013 = vmatpush1.bf16.msra.mxu1 %v3155_v10  ;;  %v1780_v10 = vrot.slane %v1763_v62, %v1779_v48 }
 0x5b9   :  { %2778 = vmatprep.subr.bf16.mxu1 %v3159_v21 }
 0x5ba   :  { %1674 = vadd.xlane.f32.xlu1 %v1669_v60 }
 0x5bc   :  { %1676 = vadd.xlane.f32.xlu0 %v1670_v29 }
 0x5c0   :  { %1678 = vadd.xlane.f32.xlu0 %v1671_v34 }
 0x645   :  { %v1673_v47 = vpop.xlane.xlu0 %1672 }
 0x646   :  { %v1681_v46 = vmul.f32 0.0078125, %v1673_v47  ;;  %v3164_v47 = vld [vmem:[%s4174_s6 + $0x8] sm:$0xff]  }
 0x647   :  { %v1675_v16 = vpop.xlane.xlu1 %1674 }
 0x648   :  { %v3914_v49 = vsub.f32 %v1668_v27, %v1681_v46  ;;  %v1682_v50 = vmul.f32 0.0078125, %v1675_v16  ;;  %v3165_v46 = vld [vmem:[%s4174_s6 + $0x88] sm:$0xff]  }
 0x649   :  { %v1677_v51 = vpop.xlane.xlu0 %1676 }
 0x64a   :  { %v3916_v35 = vsub.f32 %v1669_v60, %v1682_v50  ;;  %v1683_v53 = vmul.f32 0.0078125, %v1677_v51  ;;  %v1689_v55 = vmul.f32 %v3914_v49, %v3914_v49  ;;  %v3167_v50 = vld [vmem:[%s4174_s6 + $0xd0] sm:$0xff]  }
 0x64b   :  { %v3168_v51 = vld [vmem:[%s4174_s6 + $0x10] sm:$0xff]  }
 0x64c   :  { %v3920_v38 = vsub.f32 %v1670_v29, %v1683_v53  ;;  %1693 = vadd.xlane.f32.xlu1 %v1689_v55  ;;  %v1690_v56 = vmul.f32 %v3916_v35, %v3916_v35  ;;  %v3170_v53 = vld [vmem:[%s4174_s6 + $0x58] sm:$0xff]  }
 0x64d   :  { %v1679_v58 = vpop.xlane.xlu0 %1678  ;;  %v3171_v55 = vld [vmem:[%s4174_s6 + $0xd8] sm:$0xff]  }
 0x64e   :  { %v1684_v59 = vmul.f32 0.0078125, %v1679_v58  ;;  %1695 = vadd.xlane.f32.xlu0 %v1690_v56  ;;  %v1691_v5 = vmul.f32 %v3920_v38, %v3920_v38  ;;  %v3173_v56 = vld [vmem:[%s4174_s6 + $0x98] sm:$0xff]   ;;  %v3174_v58 = vld [vmem:[%s4174_s6 + $0x60] sm:$0xff]  }
 0x650   :  { %v3926_v17 = vsub.f32 %v1671_v34, %v1684_v59  ;;  %1697 = vadd.xlane.f32.xlu1 %v1691_v5  ;;  %v3175_v59 = vld [vmem:[%s4174_s6 + $0xe0] sm:$0xff]  }
 0x651   :  { %v3176_v5 = vld [vmem:[%s4174_s6 + $0x20] sm:$0xff]  }
 0x652   :  { %v1692_v19 = vmul.f32 %v3926_v17, %v3926_v17 }
 0x654   :  { %1699 = vadd.xlane.f32.xlu0 %v1692_v19  ;;  %v3178_v19 = vld [vmem:[%s4174_s6 + $0x68] sm:$0xff]  }
 0x6d9   :  { %v1694_v23 = vpop.xlane.xlu1 %1693 }
 0x6da   :  { %v1701_v52 = vmul.f32 0.0078125, %v1694_v23 }
 0x6db   :  { %v1696_v24 = vpop.xlane.xlu0 %1695 }
 0x6dc   :  { %v1705_v25 = vadd.f32 1e-05, %v1701_v52  ;;  %v1702_v27 = vmul.f32 0.0078125, %v1696_v24 }
 0x6dd   :  { %v1698_v54 = vpop.xlane.xlu1 %1697 }
 0x6de   :  { %3254 = vrsqrt.f32 %v1705_v25  ;;  %v1706_v60 = vadd.f32 1e-05, %v1702_v27  ;;  %v1703_v28 = vmul.f32 0.0078125, %v1698_v54 }
 0x6e0   :  { %3256 = vrsqrt.f32 %v1706_v60  ;;  %v1707_v57 = vadd.f32 1e-05, %v1703_v28 }
 0x6e1   :  { %v1700_v29 = vpop.xlane.xlu0 %1699 }
 0x6e2   :  { %v1704_v32 = vmul.f32 0.0078125, %v1700_v29  ;;  %3258 = vrsqrt.f32 %v1707_v57 }
 0x6e4   :  { %v1708_v34 = vadd.f32 1e-05, %v1704_v32 }
 0x6e6   :  { %3260 = vrsqrt.f32 %v1708_v34 }
 0x6e8   :  { %v3255_v37 = vpop.eup %3254 }
 0x6e9   :  { %v3997_v0 = vmul.f32 %v3255_v37, %v3914_v49  ;;  %v3166_v49 = vld [vmem:[%s4174_s6 + $0x50] sm:$0xff]  }
 0x6ea   :  { %v3257_v39 = vpop.eup %3256 }
 0x6eb   :  { %v4000_v12 = vmul.f32 %v3257_v39, %v3916_v35  ;;  %v3169_v35 = vld [vmem:[%s4174_s6 + $0x90] sm:$0xff]  }
 0x6ec   :  { %v3259_v44 = vpop.eup %3258 }
 0x6ed   :  { %v1729_v40 = vpack.c.bf16 %v4000_v12, %v3997_v0  ;;  %v4028_v16 = vmul.f32 %v3259_v44, %v3920_v38  ;;  %v3172_v38 = vld [vmem:[%s4174_s6 + $0x18] sm:$0xff]  }
 0x6ef   :  { %1978 = vmatmul.mubr.bf16.vlgmr.msra.gmra.mrb[44].mxu0 %v1729_v40  ;;  %2031 = vmatmul.mubr.bf16.vlgmr.msra.gmra.mrb[36].mxu1 %v1729_v40 }
 0x6f0   :  { %v3261_v45 = vpop.eup %3260  ;;  %1987 = vmatprep.mubr.bf16.mxu0 %v3306_v1  ;;  %2040 = vmatprep.mubr.bf16.mxu1 %v3306_v1 }
 0x6f1   :  { %v4019_v4 = vmul.f32 %v3261_v45, %v3926_v17  ;;  %2751 = vmatpush3.bf16.msra.mxu0 %v3160_v14  ;;  %2779 = vmatpush3.bf16.msra.mxu1 %v3161_v2  ;;  %v3177_v17 = vld [vmem:[%s4174_s6 + $0xa0] sm:$0xff]  }
 0x6f2   :  { %2752 = vmatprep.subr.bf16.mxu0 %v3162_v18  ;;  %2780 = vmatprep.subr.bf16.mxu1 %v3163_v9 }
 0x6f3   :  { %v1730_v1 = vpack.c.bf16 %v4019_v4, %v4028_v16 }
 0x6f5   :  { %2753 = vmatpush3.bf16.msra.mxu0 %v3164_v47  ;;  %2781 = vmatpush3.bf16.msra.mxu1 %v3165_v46 }
 0x6f6   :  { %2754 = vmatprep.subr.bf16.mxu0 %v3166_v49  ;;  %2782 = vmatprep.subr.bf16.mxu1 %v3167_v50 }
 0x6f7   :  { %1988 = vmatmul.mubr.bf16.gmra.mrb[48].mxu0 %v1730_v1  ;;  %2041 = vmatmul.mubr.bf16.gmra.mrb[40].mxu1 %v1730_v1 }
 0x6f9   :  { %2755 = vmatpush3.bf16.msra.mxu0 %v3168_v51  ;;  %2783 = vmatpush3.bf16.msra.mxu1 %v3169_v35 }
 0x6fa   :  { %2756 = vmatprep.subr.bf16.mxu0 %v3170_v53  ;;  %2784 = vmatprep.subr.bf16.mxu1 %v3171_v55 }
 0x6fd   :  { %2757 = vmatpush3.bf16.msra.mxu0 %v3172_v38  ;;  %2785 = vmatpush3.bf16.msra.mxu1 %v3173_v56 }
 0x6fe   :  { %2758 = vmatprep.subr.bf16.mxu0 %v3174_v58  ;;  %2786 = vmatprep.subr.bf16.mxu1 %v3175_v59 }
 0x701   :  { %2759 = vmatpush3.bf16.msra.mxu0 %v3176_v5  ;;  %2787 = vmatpush3.bf16.msra.mxu1 %v3177_v17 }
 0x702   :  { %2760 = vmatprep.subr.bf16.mxu0 %v3178_v19  ;;  %2788 = vmatprep.subr.bf16.mxu1 %v3179_v22 }
 0x705   :  { %2761 = vmatpush3.bf16.msra.mxu0 %v3180_v3  ;;  %2789 = vmatpush3.bf16.msra.mxu1 %v3181_v26 }
 0x706   :  { %2762 = vmatprep.subr.bf16.mxu0 %v3182_v7  ;;  %2790 = vmatprep.subr.bf16.mxu1 %v3183_v63 }
 0x709   :  { %2763 = vmatpush3.bf16.msra.mxu0 %v3184_v30  ;;  %2791 = vmatpush3.bf16.msra.mxu1 %v3185_v8 }
 0x70a   :  { %2764 = vmatprep.subr.bf16.mxu0 %v3186_v11  ;;  %2792 = vmatprep.subr.bf16.mxu1 %v3187_v31 }
 0x70d   :  { %2765 = vmatpush3.bf16.msra.mxu0 %v3188_v13  ;;  %2793 = vmatpush3.bf16.msra.mxu1 %v3189_v36 }
 0x7c2   :  { %v1979_v43 = vpop.f32.mrb[44].mxu0  ;;  %v2032_v21 = vpop.f32.mrb[36].mxu1 }
 0x7c3   :  { %v1980_v23 = vadd.f32 %v1979_v43, %v1768_v6  ;;  %v2033_v52 = vadd.f32 %v2032_v21, %v1776_v20  ;;  %v1981_v24 = vpop.f32.mrb[45].mxu0  ;;  %v2034_v25 = vpop.f32.mrb[37].mxu1 }
 0x7c4   :  { %v1982_v27 = vadd.f32 %v1981_v24, %v1772_v41  ;;  %v2035_v54 = vadd.f32 %v2034_v25, %v1780_v10  ;;  %v1983_v60 = vpop.f32.mrb[46].mxu0  ;;  %v2036_v28 = vpop.f32.mrb[38].mxu1 }
 0x7c5   :  { %v2067_v57 = vmul.f32 0.70710677, %v1980_v23  ;;  %v2069_v29 = vmul.f32 0.70710677, %v2033_v52  ;;  %v1984_v61 = vadd.f32 %v1983_v60, %v1768_v6  ;;  %v4111_v37 = vadd.f32 %v2036_v28, %v1776_v20  ;;  %v1985_v39 = vpop.f32.mrb[47].mxu0  ;;  %v2038_v40 = vpop.f32.mrb[39].mxu1 }
 0x7c6   :  { %v2068_v32 = vmul.f32 0.70710677, %v1982_v27  ;;  %v2070_v34 = vmul.f32 0.70710677, %v2035_v54  ;;  %v1986_v14 = vadd.f32 %v1985_v39, %v1772_v41  ;;  %v4113_v2 = vadd.f32 %v2038_v40, %v1780_v10 }
 0x7c7   :  { %3262 = verf.f32 %v2067_v57  ;;  %v2071_v18 = vmul.f32 0.70710677, %v1984_v61  ;;  %v2073_v9 = vmul.f32 0.70710677, %v4111_v37  ;;  %v2051_v31 = vmul.f32 0.5, %v1980_v23 }
 0x7c8   :  { %3264 = verf.f32 %v2069_v29  ;;  %v2072_v44 = vmul.f32 0.70710677, %v1986_v14  ;;  %v2074_v47 = vmul.f32 0.70710677, %v4113_v2  ;;  %v2053_v13 = vmul.f32 0.5, %v2033_v52 }
 0x7c9   :  { %3266 = verf.f32 %v2068_v32  ;;  %v2052_v62 = vmul.f32 0.5, %v1982_v27  ;;  %v2057_v25 = vmul.f32 0.5, %v4111_v37  ;;  %v2056_v27 = vmul.f32 0.5, %v1986_v14 }
 0x7ca   :  { %3268 = verf.f32 %v2070_v34  ;;  %v1989_v45 = vpop.f32.mrb[48].mxu0  ;;  %v2042_v1 = vpop.f32.mrb[40].mxu1 }
 0x7cb   :  { %3270 = verf.f32 %v2071_v18  ;;  %v4117_v46 = vadd.f32 %v1989_v45, %v1768_v6  ;;  %v1991_v49 = vpop.f32.mrb[49].mxu0  ;;  %v4119_v50 = vadd.f32 %v2042_v1, %v1776_v20  ;;  %v2044_v35 = vpop.f32.mrb[41].mxu1 }
 0x7cc   :  { %3272 = verf.f32 %v2073_v9  ;;  %v4121_v51 = vadd.f32 %v1991_v49, %v1772_v41  ;;  %v1993_v53 = vpop.f32.mrb[50].mxu0  ;;  %v4124_v38 = vadd.f32 %v2044_v35, %v1780_v10  ;;  %v2046_v56 = vpop.f32.mrb[42].mxu1 }
 0x7cd   :  { %3274 = verf.f32 %v2072_v44  ;;  %v2075_v55 = vmul.f32 0.70710677, %v4117_v46  ;;  %v1995_v58 = vpop.f32.mrb[51].mxu0  ;;  %v2077_v59 = vmul.f32 0.70710677, %v4119_v50  ;;  %v2048_v5 = vpop.f32.mrb[43].mxu1  ;;  %v1994_v22 = vadd.f32 %v1993_v53, %v1768_v6 }
 0x7ce   :  { %3276 = verf.f32 %v2074_v47  ;;  %v2076_v17 = vmul.f32 0.70710677, %v4121_v51  ;;  %v2078_v19 = vmul.f32 0.70710677, %v4124_v38  ;;  %v4129_v3 = vadd.f32 %v2046_v56, %v1776_v20 }
 0x7cf   :  { %3278 = verf.f32 %v2075_v55  ;;  %v4131_v26 = vadd.f32 %v1995_v58, %v1772_v41  ;;  %v2079_v30 = vmul.f32 0.70710677, %v1994_v22  ;;  %v4133_v8 = vadd.f32 %v2048_v5, %v1780_v10 }
 0x7d0   :  { %3280 = verf.f32 %v2077_v59  ;;  %v2081_v36 = vmul.f32 0.70710677, %v4129_v3  ;;  %v2054_v20 = vmul.f32 0.5, %v2035_v54  ;;  %v2055_v41 = vmul.f32 0.5, %v1984_v61 }
 0x7d1   :  { %v3263_v7 = vpop.eup %3262  ;;  %3282 = verf.f32 %v2076_v17  ;;  %v2080_v33 = vmul.f32 0.70710677, %v4131_v26  ;;  %v2082_v23 = vmul.f32 0.70710677, %v4133_v8  ;;  %v2058_v61 = vmul.f32 0.5, %v4113_v2 }
 0x7d2   :  { %v3265_v63 = vpop.eup %3264  ;;  %3284 = verf.f32 %v2078_v19  ;;  %v2099_v42 = vadd.f32 1.0, %v3263_v7  ;;  %v2059_v58 = vmul.f32 0.5, %v4117_v46  ;;  %v2061_v5 = vmul.f32 0.5, %v4119_v50 }
 0x7d3   :  { %v3267_v11 = vpop.eup %3266  ;;  %3286 = verf.f32 %v2079_v30  ;;  %v2101_v6 = vadd.f32 1.0, %v3265_v63  ;;  %v2063_v19 = vmul.f32 0.5, %v1994_v22  ;;  %v2060_v30 = vmul.f32 0.5, %v4121_v51 }
 0x7d4   :  { %v3269_v15 = vpop.eup %3268  ;;  %3288 = verf.f32 %v2081_v36  ;;  %v2100_v10 = vadd.f32 1.0, %v3267_v11  ;;  %v2115_v57 = vmul.f32 %v2099_v42, %v2051_v31  ;;  %v2065_v11 = vmul.f32 0.5, %v4129_v3 }
 0x7d5   :  { %v3271_v48 = vpop.eup %3270  ;;  %3290 = verf.f32 %v2080_v33  ;;  %v2102_v24 = vadd.f32 1.0, %v3269_v15  ;;  %v2117_v54 = vmul.f32 %v2101_v6, %v2053_v13  ;;  %v2064_v13 = vmul.f32 0.5, %v4131_v26 }
 0x7d6   :  { %v3273_v43 = vpop.eup %3272  ;;  %v2103_v21 = vadd.f32 1.0, %v3271_v48  ;;  %3292 = verf.f32 %v2082_v23  ;;  %v2116_v18 = vmul.f32 %v2100_v10, %v2052_v62  ;;  %v2062_v22 = vmul.f32 0.5, %v4124_v38 }
 0x7d7   :  { %v3275_v52 = vpop.eup %3274  ;;  %v2105_v60 = vadd.f32 1.0, %v3273_v43  ;;  %v2118_v47 = vmul.f32 %v2102_v24, %v2054_v20  ;;  %v2066_v48 = vmul.f32 0.5, %v4133_v8 }
 0x7d8   :  { %v3277_v28 = vpop.eup %3276  ;;  %v2119_v29 = vmul.f32 %v2103_v21, %v2055_v41  ;;  %v2104_v32 = vadd.f32 1.0, %v3275_v52 }
 0x7d9   :  { %v2121_v34 = vmul.f32 %v2105_v60, %v2057_v25  ;;  %v2106_v39 = vadd.f32 1.0, %v3277_v28  ;;  %v3279_v40 = vpop.eup %3278 }
 0x7da   :  { %v2135_v9 = vpack.c.bf16 %v2119_v29, %v2115_v57  ;;  %v2120_v44 = vmul.f32 %v2104_v32, %v2056_v27  ;;  %v3281_v45 = vpop.eup %3280  ;;  %v2107_v53 = vadd.f32 1.0, %v3279_v40  ;;  %v2697_v32 = vld [vmem:[%s4176_s7] ss:$0 sm:$0xff] }
 0x7db   :  { %v2137_v1 = vpack.c.bf16 %v2121_v34, %v2117_v54  ;;  %v2122_v37 = vmul.f32 %v2106_v39, %v2058_v61  ;;  %v3283_v49 = vpop.eup %3282  ;;  %v2109_v59 = vadd.f32 1.0, %v3281_v45 }
 0x7dc   :  { %v2136_v14 = vpack.c.bf16 %v2120_v44, %v2116_v18  ;;  %v3285_v35 = vpop.eup %3284  ;;  %v2108_v17 = vadd.f32 1.0, %v3283_v49  ;;  %v2123_v46 = vmul.f32 %v2107_v53, %v2059_v58 }
 0x7dd   :  { %v2138_v55 = vpack.c.bf16 %v2122_v37, %v2118_v47  ;;  %v3287_v56 = vpop.eup %3286  ;;  %v2110_v36 = vadd.f32 1.0, %v3285_v35  ;;  %v2125_v50 = vmul.f32 %v2109_v59, %v2061_v5 }
 0x7de   :  { %2431 = vmatprep.mubr.bf16.mxu0 %v2136_v14  ;;  %v3289_v2 = vpop.eup %3288  ;;  %v2111_v7 = vadd.f32 1.0, %v3287_v56  ;;  %v2124_v6 = vmul.f32 %v2108_v17, %v2060_v30 }
 0x7df   :  { %2480 = vmatprep.mubr.bf16.mxu1 %v2138_v55  ;;  %2432 = vmatmul.mubr.bf16.vlgmr.msra.gmra.mrb[52].mxu0 %v2135_v9  ;;  %v3291_v63 = vpop.eup %3290  ;;  %v2113_v31 = vadd.f32 1.0, %v3289_v2  ;;  %v2126_v43 = vmul.f32 %v2110_v36, %v2062_v22 }
 0x7e0   :  { %2481 = vmatmul.mubr.bf16.vlgmr.msra.gmra.mrb[44].mxu1 %v2137_v1  ;;  %v2127_v15 = vmul.f32 %v2111_v7, %v2063_v19  ;;  %v2112_v42 = vadd.f32 1.0, %v3291_v63  ;;  %v3293_v62 = vpop.eup %3292 }
 0x7e1   :  { %v2129_v33 = vmul.f32 %v2113_v31, %v2065_v11  ;;  %v2114_v51 = vadd.f32 1.0, %v3293_v62 }
 0x7e2   :  { %v2128_v20 = vmul.f32 %v2112_v42, %v2064_v13  ;;  %v2139_v41 = vpack.c.bf16 %v2127_v15, %v2123_v46 }
 0x7e3   :  { %v2141_v3 = vpack.c.bf16 %v2129_v33, %v2125_v50  ;;  %v2130_v10 = vmul.f32 %v2114_v51, %v2066_v48 }
 0x7e4   :  { %v2140_v26 = vpack.c.bf16 %v2128_v20, %v2124_v6 }
 0x7e5   :  { %v2142_v21 = vpack.c.bf16 %v2130_v10, %v2126_v43 }
 0x7e6   :  { %2439 = vmatprep.mubr.bf16.mxu0 %v2140_v26 }
 0x7e7   :  { %2440 = vmatmul.mubr.bf16.gmra.mrb[56].mxu0 %v2139_v41  ;;  %2488 = vmatprep.mubr.bf16.mxu1 %v2142_v21 }
 0x7e8   :  { %2489 = vmatmul.mubr.bf16.gmra.mrb[48].mxu1 %v2141_v3 }
 0x8b2   :  { %v2766_v23 = vpop.f32.mrb[52].mxu0 }
 0x8b3   :  { %v2794_v52 = vpop.f32.mrb[44].mxu1  ;;  %v2767_v24 = vpop.f32.mrb[53].mxu0 }
 0x8b4   :  { %v2768_v38 = vadd.f32 %v2767_v24, %v2766_v23  ;;  %v2795_v25 = vpop.f32.mrb[45].mxu1  ;;  %v2769_v60 = vpop.f32.mrb[54].mxu0 }
 0x8b5   :  { %v2796_v8 = vadd.f32 %v2795_v25, %v2794_v52  ;;  %v2797_v27 = vpop.f32.mrb[46].mxu1  ;;  %v2770_v28 = vpop.f32.mrb[55].mxu0 }
 0x8b6   :  { %v2771_v57 = vadd.f32 %v2770_v28, %v2769_v60  ;;  %v2798_v29 = vpop.f32.mrb[47].mxu1 }
 0x8b7   :  { %v2483_v54 = vadd.f32 %v2796_v8, %v2768_v38  ;;  %v2799_v34 = vadd.f32 %v2798_v29, %v2797_v27 }
 0x8b9   :  { %v2486_v61 = vadd.f32 %v2799_v34, %v2771_v57  ;;  %v2519_v39 = vadd.f32 %v2697_v32, %v2483_v54 }
 0x8ba   :  { %v2772_v40 = vpop.f32.mrb[56].mxu0 }
 0x8bb   :  { %v2527_v18 = vadd.f32 %v2519_v39, %v3997_v0  ;;  %v2520_v9 = vadd.f32 %v2697_v32, %v2486_v61  ;;  %v2773_v44 = vpop.f32.mrb[57].mxu0  ;;  %v2800_v45 = vpop.f32.mrb[48].mxu1 }
 0x8bc   :  { %v2774_v47 = vadd.f32 %v2773_v44, %v2772_v40  ;;  %v2775_v1 = vpop.f32.mrb[58].mxu0  ;;  %v2801_v49 = vpop.f32.mrb[49].mxu1 }
 0x8bd   :  { %2531 = vadd.xlane.f32.xlu1 %v2527_v18  ;;  %v2528_v37 = vadd.f32 %v2520_v9, %v4000_v12  ;;  %v2776_v14 = vpop.f32.mrb[59].mxu0  ;;  %v2802_v35 = vadd.f32 %v2801_v49, %v2800_v45  ;;  %v2803_v53 = vpop.f32.mrb[50].mxu1 }
 0x8be   :  { %v2777_v55 = vadd.f32 %v2776_v14, %v2775_v1  ;;  %v2804_v56 = vpop.f32.mrb[51].mxu1 }
 0x8bf   :  { %2533 = vadd.xlane.f32.xlu0 %v2528_v37  ;;  %v2491_v58 = vadd.f32 %v2802_v35, %v2774_v47  ;;  %v2805_v59 = vadd.f32 %v2804_v56, %v2803_v53 }
 0x8c1   :  { %v2494_v2 = vadd.f32 %v2805_v59, %v2777_v55  ;;  %v2521_v5 = vadd.f32 %v2697_v32, %v2491_v58 }
 0x8c3   :  { %v2529_v0 = vadd.f32 %v2521_v5, %v4028_v16  ;;  %v2522_v17 = vadd.f32 %v2697_v32, %v2494_v2 }
 0x8c5   :  { %2535 = vadd.xlane.f32.xlu1 %v2529_v0  ;;  %v2530_v19 = vadd.f32 %v2522_v17, %v4019_v4 }
 0x8c7   :  { %2537 = vadd.xlane.f32.xlu0 %v2530_v19 }
 0x94a   :  { %v2532_v7 = vpop.xlane.xlu1 %2531 }
 0x94b   :  { %v2540_v12 = vmul.f32 0.0078125, %v2532_v7 }
 0x94c   :  { %v2534_v63 = vpop.xlane.xlu0 %2533 }
 0x94d   :  { %v2544_v30 = vsub.f32 %v2527_v18, %v2540_v12  ;;  %v2541_v11 = vmul.f32 0.0078125, %v2534_v63 }
 0x94f   :  { %v2545_v31 = vsub.f32 %v2528_v37, %v2541_v11  ;;  %v2548_v13 = vmul.f32 %v2544_v30, %v2544_v30 }
 0x951   :  { %2552 = vadd.xlane.f32.xlu1 %v2548_v13  ;;  %v2549_v46 = vmul.f32 %v2545_v31, %v2545_v31 }
 0x952   :  { %v2536_v36 = vpop.xlane.xlu1 %2535 }
 0x953   :  { %2554 = vadd.xlane.f32.xlu0 %v2549_v46  ;;  %v2542_v15 = vmul.f32 0.0078125, %v2536_v36 }
 0x954   :  { %v2538_v42 = vpop.xlane.xlu0 %2537 }
 0x955   :  { %v2546_v62 = vsub.f32 %v2529_v0, %v2542_v15  ;;  %v2543_v16 = vmul.f32 0.0078125, %v2538_v42 }
 0x957   :  { %v2547_v50 = vsub.f32 %v2530_v19, %v2543_v16  ;;  %v2550_v22 = vmul.f32 %v2546_v62, %v2546_v62 }
 0x959   :  { %2556 = vadd.xlane.f32.xlu1 %v2550_v22  ;;  %v2551_v4 = vmul.f32 %v2547_v50, %v2547_v50 }
 0x95b   :  { %2558 = vadd.xlane.f32.xlu0 %v2551_v4 }
 0x9de   :  { %v2553_v33 = vpop.xlane.xlu1 %2552 }
 0x9df   :  { %v2560_v48 = vmul.f32 0.0078125, %v2553_v33 }
 0x9e0   :  { %v2555_v6 = vpop.xlane.xlu0 %2554 }
 0x9e1   :  { %v2564_v20 = vadd.f32 1e-05, %v2560_v48  ;;  %v2561_v51 = vmul.f32 0.0078125, %v2555_v6 }
 0x9e3   :  { %3294 = vrsqrt.f32 %v2564_v20  ;;  %v2565_v41 = vadd.f32 1e-05, %v2561_v51 }
 0x9e5   :  { %3296 = vrsqrt.f32 %v2565_v41 }
 0x9e6   :  { %v2557_v3 = vpop.xlane.xlu1 %2556 }
 0x9e7   :  { %v2562_v43 = vmul.f32 0.0078125, %v2557_v3 }
 0x9e8   :  { %v2559_v10 = vpop.xlane.xlu0 %2558 }
 0x9e9   :  { %v2566_v26 = vadd.f32 1e-05, %v2562_v43  ;;  %v2563_v21 = vmul.f32 0.0078125, %v2559_v10 }
 0x9eb   :  { %3298 = vrsqrt.f32 %v2566_v26  ;;  %v2567_v52 = vadd.f32 1e-05, %v2563_v21 }
 0x9ed   :  { %v3295_v23 = vpop.eup %3294  ;;  %3300 = vrsqrt.f32 %v2567_v52 }
 0x9ee   :  { %v2572_v24 = vmul.f32 %v3295_v23, %v2544_v30 }
 0x9ef   :  { %v3297_v38 = vpop.eup %3296 }
 0x9f0   :  { %2576 = vst [vmem:[%s4177_s11] sm:$0xff] %v2572_v24  ;;  %v2573_v25 = vmul.f32 %v3297_v38, %v2545_v31 }
 0x9f2   :  { %2577 = vst [vmem:[%s4177_s11 + $0x8] sm:$0xff] %v2573_v25 }
 0x9f5   :  { %v3299_v60 = vpop.eup %3298 }
 0x9f6   :  { %v2574_v8 = vmul.f32 %v3299_v60, %v2546_v62 }
 0x9f7   :  { %v3301_v27 = vpop.eup %3300 }
 0x9f8   :  { %2578 = vst [vmem:[%s4177_s11 + $0x10] sm:$0xff] %v2574_v8  ;;  %v2575_v28 = vmul.f32 %v3301_v27, %v2547_v50 }
 0x9fa   :  { %2579 = vst [vmem:[%s4177_s11 + $0x18] sm:$0xff] %v2575_v28 }

</bundles_post_ra>
